<compile_context>
chip_gen: v5e
topology: v5e:2x2
jax: 0.10.0
libtpu: 0.0.40
codegen_flags: <defaults>
</compile_context>

<pallas_src>
import functools
import math

import jax
import jax.numpy as jnp
from jax.experimental import pallas as pl
from jax.experimental.pallas import tpu as pltpu


# ----------------------------- in-kernel math helper -----------------------------

def _dot(a, b, dims):
    """dot_general with f32 accumulation; dims = (lhs_contract_dims, rhs_contract_dims)."""
    return jax.lax.dot_general(a, b, (dims, ((), ())),
                               preferred_element_type=jnp.float32)


# ----------------------------- Pallas kernel -----------------------------

def _self_attention_kernel(x_ref, wqkv_ref, bqkv_ref, gamma_ref, o_ref, *, c8p):
    """SAGAN self-attention for one batch row.

    x_ref    : (1, C, N)            channel-major activations, N = H*W (lane dim)
    wqkv_ref : (2*c8p + C, C)       [Wq (padded to c8p rows); Wk (padded); Wv]
    bqkv_ref : (2*c8p + C, 1)       matching stacked biases (padded rows are 0)
    gamma_ref: (1, 1)               scalar residual gate
    o_ref    : (1, C, N)
    """
    x = x_ref[0]                                                   # (C, N)

    # Fused 1x1 convolutions: qkv[oc, n] = sum_c Wqkv[oc, c] * x[c, n] + b[oc]
    qkv = _dot(wqkv_ref[...], x, ((1,), (0,))) + bqkv_ref[...]     # (2*c8p+C, N)

    q = qkv[0:c8p, :]                                              # (c8p, N)
    k = qkv[c8p:2 * c8p, :]                                        # (c8p, N)
    v = qkv[2 * c8p:, :]                                           # (C,   N)

    # attention[i, j] = <Q[:, i], K[:, j]>  (padded zero rows contribute nothing)
    logits = _dot(q, k, ((0,), (0,)))                              # (N, N)
    logits = logits - jnp.max(logits, axis=-1, keepdims=True)
    e = jnp.exp(logits)
    attn = e * pl.reciprocal(jnp.sum(e, axis=-1, keepdims=True), approx=True)

    # out[c, i] = sum_j V[c, j] * attention[i, j]  ==  V @ attention^T
    out = _dot(v, attn, ((1,), (1,)))                              # (C, N)

    o_ref[0] = gamma_ref[...] * out + x


# ----------------------------- pallas_call wrapper -----------------------------

def self_attention(x, wq, bq, wk, bk, wv, bv, gamma):
    """x: (B, C, H, W) f32.  Conv1x1 weights are (out_c, in_c), biases (out_c,)."""
    B, C, H, W = x.shape
    N = H * W
    c8 = C // 8
    assert c8 >= 1, "in_channels must be >= 8 (C//8 output channels for Q/K)"
    c8p = ((c8 + 7) // 8) * 8          # pad Q/K rows to a sublane multiple

    def pad_rows(a, rows):
        if a.shape[0] == rows:
            return a
        pad = jnp.zeros((rows - a.shape[0],) + a.shape[1:], a.dtype)
        return jnp.concatenate([a, pad], axis=0)

    # Stack [Wq_pad; Wk_pad; Wv] so the kernel does a single fused matmul.
    w_qkv = jnp.concatenate([pad_rows(wq, c8p), pad_rows(wk, c8p), wv], axis=0)
    b_qkv = jnp.concatenate([pad_rows(bq, c8p), pad_rows(bk, c8p), bv],
                            axis=0)[:, None]                       # (2*c8p+C, 1)
    gamma2 = jnp.asarray(gamma, jnp.float32).reshape(1, 1)

    x2 = x.reshape(B, C, N)            # lane-dense last dim (N = H*W)

    def full_spec(a):
        nd = a.ndim
        return pl.BlockSpec(a.shape, lambda b, _nd=nd: (0,) * _nd)

    out = pl.pallas_call(
        functools.partial(_self_attention_kernel, c8p=c8p),
        out_shape=jax.ShapeDtypeStruct((B, C, N), x.dtype),
        grid=(B,),
        in_specs=[pl.BlockSpec((1, C, N), lambda b: (b, 0, 0)),
                  full_spec(w_qkv), full_spec(b_qkv), full_spec(gamma2)],
        out_specs=pl.BlockSpec((1, C, N), lambda b: (b, 0, 0)),
        compiler_params=pltpu.CompilerParams(
            dimension_semantics=("parallel",)),
    )(x2, w_qkv, b_qkv, gamma2)

    return out.reshape(B, C, H, W)


# ----------------------------- deterministic parameter init -----------------------------

def init_params(key, in_channels):
    c8 = in_channels // 8

    def conv_w(kk, out_c, in_c):
        bound = 1.0 / math.sqrt(in_c)
        return jax.random.uniform(kk, (out_c, in_c), jnp.float32, -bound, bound)

    def conv_b(kk, out_c, in_c):
        bound = 1.0 / math.sqrt(in_c)
        return jax.random.uniform(kk, (out_c,), jnp.float32, -bound, bound)

    ks = jax.random.split(key, 6)
    params = dict(
        wq=conv_w(ks[0], c8, in_channels), bq=conv_b(ks[1], c8, in_channels),
        wk=conv_w(ks[2], c8, in_channels), bk=conv_b(ks[3], c8, in_channels),
        wv=conv_w(ks[4], in_channels, in_channels),
        bv=conv_b(ks[5], in_channels, in_channels),
        gamma=jnp.zeros((1,), jnp.float32),   # nn.Parameter(torch.zeros(1))
    )
    return params


# ----------------------------- main -----------------------------

if __name__ == "__main__":
    # in_channels must be >= 8 so C//8 >= 1 (matches the PyTorch module's constraint);
    # 16x16 spatial gives N = 256, a lane-dense (multiple of 128) sequence length.
    batch, channels, height, width = 2, 32, 16, 16

    key = jax.random.PRNGKey(0)
    kx, kp = jax.random.split(key)
    x = jax.random.normal(kx, (batch, channels, height, width), jnp.float32)
    p = init_params(kp, channels)

    out = self_attention(x, p["wq"], p["bq"], p["wk"], p["bk"],
                         p["wv"], p["bv"], p["gamma"])
    jax.block_until_ready(out)
    assert out.shape == (batch, channels, height, width)
    assert out.dtype == jnp.float32
    print("KERNEL_OK")
</pallas_src>

<mosaic_0001>
module attributes {stable_mosaic.version = 11 : i64} {
  func.func @_self_attention_kernel(%arg0: i32, %arg1: memref<1x32x256xf32, #tpu.memory_space<vmem>>, %arg2: memref<48x32xf32, #tpu.memory_space<vmem>>, %arg3: memref<48x1xf32, #tpu.memory_space<vmem>>, %arg4: memref<1x1xf32, #tpu.memory_space<vmem>>, %arg5: memref<1x32x256xf32, #tpu.memory_space<vmem>>) attributes {dimension_semantics = [#tpu.dimension_semantics<parallel>], iteration_bounds = array<i64: 2>, scalar_prefetch = 0 : i64, scratch_operands = 0 : i64, tpu.core_type = #tpu.core_type<tc>, window_params = [{transform_indices = @transform_0, window_bounds = array<i64: 1, 32, 256>}, {pipeline_mode = #tpu.pipeline_mode<synchronous>, transform_indices = @transform_1, window_bounds = array<i64: 48, 32>}, {pipeline_mode = #tpu.pipeline_mode<synchronous>, transform_indices = @transform_2, window_bounds = array<i64: 48, 1>}, {pipeline_mode = #tpu.pipeline_mode<synchronous>, transform_indices = @transform_3, window_bounds = array<i64: 1, 1>}, {transform_indices = @transform_4, window_bounds = array<i64: 1, 32, 256>}]} {
    %c0 = arith.constant 0 : index
    %c0_0 = arith.constant 0 : index
    %c0_1 = arith.constant 0 : index
    %0 = vector.load %arg1[%c0, %c0_0, %c0_1] : memref<1x32x256xf32, #tpu.memory_space<vmem>>, vector<1x32x256xf32>
    %1 = vector.shape_cast %0 : vector<1x32x256xf32> to vector<32x256xf32>
    %c0_2 = arith.constant 0 : index
    %c0_3 = arith.constant 0 : index
    %2 = vector.load %arg2[%c0_2, %c0_3] : memref<48x32xf32, #tpu.memory_space<vmem>>, vector<48x32xf32>
    %cst = arith.constant dense<0.000000e+00> : vector<48x256xf32>
    %3 = tpu.matmul %2, %1, %cst {dimension_numbers = #tpu.dot_dimension_numbers<[1], [0], [0], [1], [0, 0, 1, 1], [], []>} : vector<48x32xf32>, vector<32x256xf32>, vector<48x256xf32> -> vector<48x256xf32>
    %c0_4 = arith.constant 0 : index
    %c0_5 = arith.constant 0 : index
    %4 = vector.load %arg3[%c0_4, %c0_5] : memref<48x1xf32, #tpu.memory_space<vmem>>, vector<48x1xf32>
    %5 = vector.broadcast %4 : vector<48x1xf32> to vector<48x256xf32>
    %6 = arith.addf %3, %5 : vector<48x256xf32>
    %7 = vector.extract_strided_slice %6 {offsets = [0, 0], sizes = [8, 256], strides = [1, 1]} : vector<48x256xf32> to vector<8x256xf32>
    %8 = vector.extract_strided_slice %6 {offsets = [8, 0], sizes = [8, 256], strides = [1, 1]} : vector<48x256xf32> to vector<8x256xf32>
    %9 = vector.extract_strided_slice %6 {offsets = [16, 0], sizes = [32, 256], strides = [1, 1]} : vector<48x256xf32> to vector<32x256xf32>
    %cst_6 = arith.constant dense<0.000000e+00> : vector<256x256xf32>
    %10 = tpu.matmul %7, %8, %cst_6 {dimension_numbers = #tpu.dot_dimension_numbers<[0], [0], [1], [1], [0, 1, 1, 1], [], []>} : vector<8x256xf32>, vector<8x256xf32>, vector<256x256xf32> -> vector<256x256xf32>
    %cst_7 = arith.constant dense<0xFF800000> : vector<256xf32>
    %11 = vector.multi_reduction <maximumf>, %10, %cst_7 [1] : vector<256x256xf32> to vector<256xf32>
    %12 = vector.shape_cast %11 : vector<256xf32> to vector<256x1xf32>
    %13 = vector.broadcast %12 : vector<256x1xf32> to vector<256x256xf32>
    %14 = arith.subf %10, %13 : vector<256x256xf32>
    %15 = math.exp %14 : vector<256x256xf32>
    %cst_8 = arith.constant dense<0.000000e+00> : vector<256xf32>
    %16 = vector.multi_reduction <add>, %15, %cst_8 [1] : vector<256x256xf32> to vector<256xf32>
    %17 = vector.shape_cast %16 : vector<256xf32> to vector<256x1xf32>
    %18 = tpu.reciprocal %17 {approx = true} : vector<256x1xf32> -> vector<256x1xf32>
    %19 = vector.broadcast %18 : vector<256x1xf32> to vector<256x256xf32>
    %20 = arith.mulf %15, %19 : vector<256x256xf32>
    %cst_9 = arith.constant dense<0.000000e+00> : vector<32x256xf32>
    %21 = tpu.matmul %9, %20, %cst_9 {dimension_numbers = #tpu.dot_dimension_numbers<[1], [1], [0], [0], [0, 0, 1, 0], [], []>} : vector<32x256xf32>, vector<256x256xf32>, vector<32x256xf32> -> vector<32x256xf32>
    %c0_10 = arith.constant 0 : index
    %c0_11 = arith.constant 0 : index
    %22 = vector.load %arg4[%c0_10, %c0_11] : memref<1x1xf32, #tpu.memory_space<vmem>>, vector<1x1xf32>
    %23 = vector.broadcast %22 : vector<1x1xf32> to vector<32x256xf32>
    %24 = arith.mulf %23, %21 : vector<32x256xf32>
    %25 = arith.addf %24, %1 : vector<32x256xf32>
    %c0_12 = arith.constant 0 : index
    %c0_13 = arith.constant 0 : index
    %c0_14 = arith.constant 0 : index
    %26 = vector.load %arg5[%c0_12, %c0_13, %c0_14] : memref<1x32x256xf32, #tpu.memory_space<vmem>>, vector<1x32x256xf32>
    %27 = vector.shape_cast %26 : vector<1x32x256xf32> to vector<32x256xf32>
    %28 = vector.shape_cast %25 : vector<32x256xf32> to vector<1x32x256xf32>
    tpu.vector_store %arg5[%c0_12, %c0_13, %c0_14], %28 {strides = array<i32>} : memref<1x32x256xf32, #tpu.memory_space<vmem>>, vector<1x32x256xf32>,
    return
  }
  func.func @transform_0(%arg0: i32) -> (i32, i32, i32) {
    %c0_i32 = arith.constant 0 : i32
    %c0_i32_0 = arith.constant 0 : i32
    %c0_i32_1 = arith.constant 0 : i32
    return %arg0, %c0_i32, %c0_i32_0 : i32, i32, i32
  }
  func.func @transform_1(%arg0: i32) -> (i32, i32) {
    %c0_i32 = arith.constant 0 : i32
    %c0_i32_0 = arith.constant 0 : i32
    %c0_i32_1 = arith.constant 0 : i32
    return %c0_i32, %c0_i32_0 : i32, i32
  }
  func.func @transform_2(%arg0: i32) -> (i32, i32) {
    %c0_i32 = arith.constant 0 : i32
    %c0_i32_0 = arith.constant 0 : i32
    %c0_i32_1 = arith.constant 0 : i32
    return %c0_i32, %c0_i32_0 : i32, i32
  }
  func.func @transform_3(%arg0: i32) -> (i32, i32) {
    %c0_i32 = arith.constant 0 : i32
    %c0_i32_0 = arith.constant 0 : i32
    %c0_i32_1 = arith.constant 0 : i32
    return %c0_i32, %c0_i32_0 : i32, i32
  }
  func.func @transform_4(%arg0: i32) -> (i32, i32, i32) {
    %c0_i32 = arith.constant 0 : i32
    %c0_i32_0 = arith.constant 0 : i32
    %c0_i32_1 = arith.constant 0 : i32
    return %arg0, %c0_i32, %c0_i32_0 : i32, i32, i32
  }
}

</mosaic_0001>

<bundles_post_ra>
// kernel: tpu_custom_call.1
= control target key start
LH: loop header
LB: loop body
LE: loop exit
PB: predicated region body
PF: predicated region fallthrough
CT: control target
= control target key end

     0   :  { %s2766_s0 = inlined_call_operand.vmem [shape: f32[2,32,256], index: 0, kind: input, shape index: {}]   ;;  %s2767_s1 = inlined_call_operand.vmem [shape: f32[48,32], index: 1, kind: input, shape index: {}]   ;;  %s2768_s2 = inlined_call_operand.vmem [shape: f32[48,1], index: 2, kind: input, shape index: {}]   ;;  %s2769_s3 = inlined_call_operand.<no memory space> [shape: f32[1,1], index: 3, kind: input, shape index: {}]   ;;  %s2770_s4 = inlined_call_operand.hbm [shape: f32[2,32,256], index: 4, kind: output, shape index: {}]  }
   0x1   :  { %v9_v0 = vstv %s2769_s3 }
   0x2   :  { %10 = vst [vmem:[#allocation2] sm:$0x1] %v9_v0 }
   0x3   :  { %11 = vsyncpa [#allocation4], 0 }
   0x4   :  { %13 = vsyncpa [#allocation4 + $0x1], 0  ;;  %s1860_s17 = smov 0   ;;  %s1862_s18 = smov 0  }
   0x5   :  { %s1864_s19 = smov 0   ;;  %s1866_s20 = smov 0  }
   0x6 LB: > { %s1881_s3 = sadd.s32 4294967295, %s1827_s20   ;;  %s1429_s21 = sadd.s32 4294967294, %s1827_s20   ;;  %s1827_s20 = sphi %s1866_s20, %s2893_s20   ;;  %s1823_s19 = sphi %s1864_s19, %s2892_s19   ;;  %s1819_s18 = sphi %s1862_s18, %s2891_s18   ;;  %s1815_s17 = sphi %s1860_s17, %s2890_s17  }
   0x7   : > { %s1885_s22 = sadd.s32 1, %s1827_s20   ;;  %s115_s23 = sadd.s32 1, %s1823_s19 }
   0x8   : > { %s112_s24 = ssub.s32 %s1827_s20, %s1885_s22  ;;  %p125_p0 = scmp.ne.s32.totalorder %s1823_s19, %s1819_s18 }
   0x9   : > { %p113_p1 = scmp.eq.s32.totalorder %s112_s24, 0  ;;  %p126_p2 = scmp.eq.s32.totalorder %s1881_s3, 1 }
   0xa   : > { %p131_p3 = scmp.ne.s32.totalorder %s1819_s18, %s1815_s17  ;;  %p132_p4 = scmp.eq.s32.totalorder %s1429_s21, 1 }
   0xb   : > { %s1896_s25 = scalar_select %p113_p1, %s1823_s19, %s115_s23  }
   0xc   : > { %p1898_p5 = por %p126_p2, %p125_p0  ;;  %p1902_p6 = por %p132_p4, %p131_p3 }
   0xd   : > { %p1432_p7 = scmp.ge.s32.totalorder %s1827_s20, 1  ;;  %p167_p8 = scmp.lt.s32.totalorder %s1827_s20, 3 }
   0xf   : > { %p168_p9 = pnand %p1432_p7, %p167_p8 }
  0x11   : > { %171 = sbr.rel (%p168_p9) target bundleno = 1358 (0x54e), region = 36 }
  0x16   : > { %p193_p10 = scmp.lt.s32.totalorder %s1881_s3, 1  ;;  %v212_v1 = vld [vmem:[%s2768_s2] sm:$0xff]  ;;  %v1829_v2 = vmov 0   ;;  %v213_v7 = vld [vmem:[%s2768_s2 + $0x8] sm:$0xff]  ;;  %vm248_vm0 = vcmask 261120   ;;  %vm401_vm1 = vcmask 64512  }
  0x17   : > { %1562 = vset.pattern.permute.xlu0 %v1829_v2  ;;  %1563 = vset.pattern.permute.xlu2 %v1829_v2  ;;  %v206_v12 = vld [vmem:[%s2767_s1] sm:$0xff]  ;;  %v207_v13 = vld [vmem:[%s2767_s1 + $0x8] sm:$0xff]  ;;  %s190_s14 = sand.u32 1, %s1819_s18   ;;  %s1518_s21 = sshll.u32 %s1881_s3, 6 }
  0x18   : > { %s194_s30 = scalar_select %p193_p10, %s1881_s3, 1  ;;  %220 = vperm.xlu0 %1562, %v212_v1  }
  0x19   : > { %s1433_s15 = sshll.u32 %s190_s14, 6  ;;  %s1363_s28 = scalar_lea.hbm %s2770_s4, %s1518_s21 }
  0x1a   : > { %s1517_s5 = sshll.u32 %s194_s30, 6  ;;  %s2702_s16 = scalar_lea.vmem [#allocation3], %s1433_s15 }
  0x1b   : > { %s1916_s8 = scalar_lea.vmem %s2766_s0, %s1517_s5  ;;  %s1364_s29 = sshll.u32 %s2702_s16, 4  ;;  %s1365_s29 = int_to_ptr.vmem [resolvable:$true] %s1364_s29 }
  0x1c   : > { %v204_v3 = vld [vmem:[%s1916_s8 + $0x30] sm:$0xff]  ;;  %v205_v4 = vld [vmem:[%s1916_s8 + $0x38] sm:$0xff]  ;;  %v202_v5 = vld [vmem:[%s1916_s8 + $0x20] sm:$0xff]  ;;  %s1366_s30 = sshll.u32 %s1363_s28, 4  ;;  %s1352_s3 = scalar_lea.sflag [#allocation4], %s190_s14  ;;  %s1367_s30 = int_to_ptr.hbm [resolvable:$true] %s1366_s30 }
  0x1d   : > { %279 = vmatpush.msra.mxu0 %v204_v3  ;;  %314 = vmatpush.msra.mxu1 %v205_v4  ;;  %v203_v6 = vld [vmem:[%s1916_s8 + $0x28] sm:$0xff]  ;;  %v200_v8 = vld [vmem:[%s1916_s8 + $0x10] sm:$0xff]  ;;  %v201_v9 = vld [vmem:[%s1916_s8 + $0x18] sm:$0xff]  ;;  %s1779_s5 = sshra.s32 %s1367_s30, 4  ;;  %s1785_s10 = scalar_lea.hbm %s2770_s4, 128  ;;  %s1780_s5 = int_to_ptr.hbm [resolvable:$true] %s1779_s5 }
  0x1e   : > { %v198_v10 = vld [vmem:[%s1916_s8] sm:$0xff]  ;;  %v199_v11 = vld [vmem:[%s1916_s8 + $0x8] sm:$0xff]  ;;  %s1781_s6 = scalar_lea.hbm %s1780_s5, 64  ;;  %p1786_p0 = scmp.lt.s32.totalorder %s1780_s5, %s2770_s4 }
  0x1f   : > { %280 = vmatpush.msra.mxu0 %v202_v5  ;;  %315 = vmatpush.msra.mxu1 %v203_v6  ;;  %p1782_p11 = scmp.ne.s32.totalorder %s1780_s5, %s1781_s6  ;;  %p1787_p1 = scmp.lt.s32.totalorder %s1785_s10, %s1781_s6 }
  0x20   : > { %225 = vperm.xlu0 %1562, %v213_v7  }
  0x21   : > { %281 = vmatpush.msra.mxu0 %v200_v8  ;;  %316 = vmatpush.msra.mxu1 %v201_v9  ;;  %p1783_p12 = pnand %p1782_p11, %p1898_p5  ;;  %p1788_p2 = por %p1787_p1, %p1786_p0 }
  0x23   : > { %282 = vmatpush.msra.mxu0 %v198_v10  ;;  %317 = vmatpush.msra.mxu1 %v199_v11  ;;  %p1784_p13 = pneg %p1783_p12 }
  0x24   : > { %1436 = vmatmul.msk.f32.vlgmr.msra.gmra.mxu0 %vm248_vm0, %v206_v12  ;;  %1442 = vmatmul.msk.f32.vlgmr.msra.gmra.mxu1 %vm248_vm0, %v206_v12 }
  0x25   : > { %p1789_p3 = pnand %p1788_p2, %p1784_p13 }
  0x2c   : > { %1437 = vmatmul.msk.f32.gmra.mxu0 %vm248_vm0, %v207_v13  ;;  %1443 = vmatmul.msk.f32.gmra.mxu1 %vm248_vm0, %v207_v13 }
  0x8a   : > { %v221_v14 = vpop.permute.xlu0 %220 }
  0x92   : > { %v226_v19 = vpop.permute.xlu0 %225 }
  0xa1   : > { %v284_v15 = vpop.f32.mrf.mxu0  ;;  %v319_v16 = vpop.f32.mrf.mxu1 }
  0xa2   : > { %v320_v17 = vadd.f32 %v319_v16, %v221_v14  ;;  %v285_v18 = vadd.f32 %v284_v15, %v221_v14 }
  0xa4   : > { %337 = vxpose.xlu1.b32.start.end [1/1] (short) %v285_v18, 128 }
  0xa9   : > { %v287_v20 = vpop.f32.mrf.mxu0  ;;  %v322_v21 = vpop.f32.mrf.mxu1 }
  0xaa   : > { %v288_v22 = vadd.f32 %v287_v20, %v226_v19  ;;  %v323_v23 = vadd.f32 %v322_v21, %v226_v19 }
  0xac   : > { %513 = vmatpush.msra.mxu2 %v288_v22  ;;  %626 = vmatpush.msra.mxu3 %v323_v23 }
 0x124   : > { %369 = vxpose.xlu1.b32.start.end [1/1] (short) %v320_v17, 128 }
 0x148   : > { %v353_v24 = vpop.trf.xlu1 }
 0x149   : > { %1448 = vmatmul.msk.f32.vlgmr.msra.gmra.mxu2 %vm401_vm1, %v353_v24  ;;  %1480 = vmatmul.msk.f32.vlgmr.msra.gmra.mxu3 %vm401_vm1, %v353_v24 }
 0x150   : > { %v354_v25 = vpop.trf.xlu1 }
 0x151   : > { %1449 = vmatmul.msk.f32.gmra.mxu2 %vm401_vm1, %v354_v25  ;;  %1481 = vmatmul.msk.f32.gmra.mxu3 %vm401_vm1, %v354_v25 }
 0x158   : > { %v355_v26 = vpop.trf.xlu1 }
 0x159   : > { %1450 = vmatmul.msk.f32.gmra.mxu2 %vm401_vm1, %v355_v26  ;;  %1482 = vmatmul.msk.f32.gmra.mxu3 %vm401_vm1, %v355_v26 }
 0x160   : > { %v356_v27 = vpop.trf.xlu1 }
 0x161   : > { %1451 = vmatmul.msk.f32.gmra.mxu2 %vm401_vm1, %v356_v27  ;;  %1483 = vmatmul.msk.f32.gmra.mxu3 %vm401_vm1, %v356_v27 }
 0x168   : > { %v357_v28 = vpop.trf.xlu1 }
 0x169   : > { %1452 = vmatmul.msk.f32.gmra.mxu2 %vm401_vm1, %v357_v28  ;;  %1484 = vmatmul.msk.f32.gmra.mxu3 %vm401_vm1, %v357_v28 }
 0x170   : > { %v358_v29 = vpop.trf.xlu1 }
 0x171   : > { %1453 = vmatmul.msk.f32.gmra.mxu2 %vm401_vm1, %v358_v29  ;;  %1485 = vmatmul.msk.f32.gmra.mxu3 %vm401_vm1, %v358_v29 }
 0x178   : > { %v359_v30 = vpop.trf.xlu1 }
 0x179   : > { %1454 = vmatmul.msk.f32.gmra.mxu2 %vm401_vm1, %v359_v30  ;;  %1486 = vmatmul.msk.f32.gmra.mxu3 %vm401_vm1, %v359_v30 }
 0x180   : > { %v360_v31 = vpop.trf.xlu1 }
 0x181   : > { %1455 = vmatmul.msk.f32.gmra.mxu2 %vm401_vm1, %v360_v31  ;;  %1487 = vmatmul.msk.f32.gmra.mxu3 %vm401_vm1, %v360_v31 }
 0x188   : > { %v361_v32 = vpop.trf.xlu1 }
 0x189   : > { %1456 = vmatmul.msk.f32.gmra.mxu2 %vm401_vm1, %v361_v32  ;;  %1488 = vmatmul.msk.f32.gmra.mxu3 %vm401_vm1, %v361_v32 }
 0x190   : > { %v362_v33 = vpop.trf.xlu1 }
 0x191   : > { %1457 = vmatmul.msk.f32.gmra.mxu2 %vm401_vm1, %v362_v33  ;;  %1489 = vmatmul.msk.f32.gmra.mxu3 %vm401_vm1, %v362_v33 }
 0x198   : > { %v363_v34 = vpop.trf.xlu1 }
 0x199   : > { %1458 = vmatmul.msk.f32.gmra.mxu2 %vm401_vm1, %v363_v34  ;;  %1490 = vmatmul.msk.f32.gmra.mxu3 %vm401_vm1, %v363_v34 }
 0x1a0   : > { %v364_v35 = vpop.trf.xlu1 }
 0x1a1   : > { %1459 = vmatmul.msk.f32.gmra.mxu2 %vm401_vm1, %v364_v35  ;;  %1491 = vmatmul.msk.f32.gmra.mxu3 %vm401_vm1, %v364_v35 }
 0x1a8   : > { %v365_v36 = vpop.trf.xlu1 }
 0x1a9   : > { %1460 = vmatmul.msk.f32.gmra.mxu2 %vm401_vm1, %v365_v36  ;;  %1492 = vmatmul.msk.f32.gmra.mxu3 %vm401_vm1, %v365_v36 }
 0x1b0   : > { %v366_v37 = vpop.trf.xlu1 }
 0x1b1   : > { %1461 = vmatmul.msk.f32.gmra.mxu2 %vm401_vm1, %v366_v37  ;;  %1493 = vmatmul.msk.f32.gmra.mxu3 %vm401_vm1, %v366_v37 }
 0x1b8   : > { %v367_v38 = vpop.trf.xlu1 }
 0x1b9   : > { %1462 = vmatmul.msk.f32.gmra.mxu2 %vm401_vm1, %v367_v38  ;;  %1494 = vmatmul.msk.f32.gmra.mxu3 %vm401_vm1, %v367_v38 }
 0x1c0   : > { %v368_v39 = vpop.trf.xlu1 }
 0x1c1   : > { %1463 = vmatmul.msk.f32.gmra.mxu2 %vm401_vm1, %v368_v39  ;;  %1495 = vmatmul.msk.f32.gmra.mxu3 %vm401_vm1, %v368_v39 }
 0x1c8   : > { %v385_v40 = vpop.trf.xlu1 }
 0x1c9   : > { %1464 = vmatmul.msk.f32.gmra.mxu2 %vm401_vm1, %v385_v40  ;;  %1496 = vmatmul.msk.f32.gmra.mxu3 %vm401_vm1, %v385_v40 }
 0x1cc   : > { %v1973_v41 = vpop.f32.mrf.mxu2  ;;  %v1975_v42 = vpop.f32.mrf.mxu3 }
 0x1cd   : > { %2812 = vst [vmem:[#allocation6_spill] sm:$0xff] %v1975_v42  ;;  %v724_v43 = vmax.f32 %v1973_v41, %v1975_v42 }
 0x1cf   : > { %725 = vmax.xlane.f32.xlu2 %v724_v43 }
 0x1d0   : > { %v386_v44 = vpop.trf.xlu1 }
 0x1d1   : > { %1465 = vmatmul.msk.f32.gmra.mxu2 %vm401_vm1, %v386_v44  ;;  %1497 = vmatmul.msk.f32.gmra.mxu3 %vm401_vm1, %v386_v44 }
 0x1d4   : > { %v1981_v45 = vpop.f32.mrf.mxu2  ;;  %v1983_v46 = vpop.f32.mrf.mxu3 }
 0x1d5   : > { %v727_v47 = vmax.f32 %v1981_v45, %v1983_v46 }
 0x1d7   : > { %728 = vmax.xlane.f32.xlu0 %v727_v47 }
 0x1d8   : > { %v387_v48 = vpop.trf.xlu1 }
 0x1d9   : > { %1466 = vmatmul.msk.f32.gmra.mxu2 %vm401_vm1, %v387_v48  ;;  %1498 = vmatmul.msk.f32.gmra.mxu3 %vm401_vm1, %v387_v48 }
 0x1dc   : > { %v1989_v49 = vpop.f32.mrf.mxu2  ;;  %v1991_v50 = vpop.f32.mrf.mxu3 }
 0x1dd   : > { %v730_v51 = vmax.f32 %v1989_v49, %v1991_v50 }
 0x1df   : > { %731 = vmax.xlane.f32.xlu2 %v730_v51 }
 0x1e0   : > { %v388_v52 = vpop.trf.xlu1 }
 0x1e1   : > { %1467 = vmatmul.msk.f32.gmra.mxu2 %vm401_vm1, %v388_v52  ;;  %1499 = vmatmul.msk.f32.gmra.mxu3 %vm401_vm1, %v388_v52 }
 0x1e4   : > { %v1997_v53 = vpop.f32.mrf.mxu2  ;;  %v1999_v54 = vpop.f32.mrf.mxu3 }
 0x1e5   : > { %v733_v55 = vmax.f32 %v1997_v53, %v1999_v54 }
 0x1e7   : > { %734 = vmax.xlane.f32.xlu2 %v733_v55 }
 0x1e8   : > { %v389_v56 = vpop.trf.xlu1 }
 0x1e9   : > { %1468 = vmatmul.msk.f32.gmra.mxu2 %vm401_vm1, %v389_v56  ;;  %1500 = vmatmul.msk.f32.gmra.mxu3 %vm401_vm1, %v389_v56 }
 0x1ec   : > { %v2005_v57 = vpop.f32.mrf.mxu2  ;;  %v2007_v58 = vpop.f32.mrf.mxu3 }
 0x1ed   : > { %v736_v59 = vmax.f32 %v2005_v57, %v2007_v58 }
 0x1ef   : > { %737 = vmax.xlane.f32.xlu2 %v736_v59 }
 0x1f0   : > { %v390_v60 = vpop.trf.xlu1 }
 0x1f1   : > { %1469 = vmatmul.msk.f32.gmra.mxu2 %vm401_vm1, %v390_v60  ;;  %1501 = vmatmul.msk.f32.gmra.mxu3 %vm401_vm1, %v390_v60 }
 0x1f4   : > { %v2013_v61 = vpop.f32.mrf.mxu2  ;;  %v2015_v62 = vpop.f32.mrf.mxu3 }
 0x1f5   : > { %v739_v63 = vmax.f32 %v2013_v61, %v2015_v62 }
 0x1f7   : > { %740 = vmax.xlane.f32.xlu2 %v739_v63 }
 0x1f8   : > { %v391_v0 = vpop.trf.xlu1 }
 0x1f9   : > { %1470 = vmatmul.msk.f32.gmra.mxu2 %vm401_vm1, %v391_v0  ;;  %1502 = vmatmul.msk.f32.gmra.mxu3 %vm401_vm1, %v391_v0 }
 0x1fc   : > { %v2021_v1 = vpop.f32.mrf.mxu2  ;;  %v2023_v2 = vpop.f32.mrf.mxu3 }
 0x1fd   : > { %v742_v3 = vmax.f32 %v2021_v1, %v2023_v2 }
 0x1ff   : > { %743 = vmax.xlane.f32.xlu2 %v742_v3 }
 0x200   : > { %v392_v4 = vpop.trf.xlu1 }
 0x201   : > { %1471 = vmatmul.msk.f32.gmra.mxu2 %vm401_vm1, %v392_v4  ;;  %1503 = vmatmul.msk.f32.gmra.mxu3 %vm401_vm1, %v392_v4 }
 0x204   : > { %v2029_v5 = vpop.f32.mrf.mxu2  ;;  %v2031_v6 = vpop.f32.mrf.mxu3 }
 0x205   : > { %v745_v7 = vmax.f32 %v2029_v5, %v2031_v6 }
 0x207   : > { %746 = vmax.xlane.f32.xlu2 %v745_v7 }
 0x208   : > { %v393_v8 = vpop.trf.xlu1 }
 0x209   : > { %1472 = vmatmul.msk.f32.gmra.mxu2 %vm401_vm1, %v393_v8  ;;  %1504 = vmatmul.msk.f32.gmra.mxu3 %vm401_vm1, %v393_v8 }
 0x20c   : > { %v2037_v9 = vpop.f32.mrf.mxu2  ;;  %v2039_v10 = vpop.f32.mrf.mxu3 }
 0x20d   : > { %v748_v11 = vmax.f32 %v2037_v9, %v2039_v10 }
 0x20f   : > { %749 = vmax.xlane.f32.xlu2 %v748_v11 }
 0x210   : > { %v394_v12 = vpop.trf.xlu1 }
 0x211   : > { %1473 = vmatmul.msk.f32.gmra.mxu2 %vm401_vm1, %v394_v12  ;;  %1505 = vmatmul.msk.f32.gmra.mxu3 %vm401_vm1, %v394_v12 }
 0x214   : > { %v2045_v13 = vpop.f32.mrf.mxu2  ;;  %v2047_v14 = vpop.f32.mrf.mxu3 }
 0x215   : > { %v751_v15 = vmax.f32 %v2045_v13, %v2047_v14 }
 0x217   : > { %752 = vmax.xlane.f32.xlu2 %v751_v15 }
 0x218   : > { %v395_v16 = vpop.trf.xlu1 }
 0x219   : > { %1474 = vmatmul.msk.f32.gmra.mxu2 %vm401_vm1, %v395_v16  ;;  %1506 = vmatmul.msk.f32.gmra.mxu3 %vm401_vm1, %v395_v16 }
 0x21c   : > { %v2053_v17 = vpop.f32.mrf.mxu2  ;;  %v2055_v18 = vpop.f32.mrf.mxu3 }
 0x21d   : > { %v754_v19 = vmax.f32 %v2053_v17, %v2055_v18 }
 0x21f   : > { %755 = vmax.xlane.f32.xlu2 %v754_v19 }
 0x220   : > { %v396_v20 = vpop.trf.xlu1 }
 0x221   : > { %1475 = vmatmul.msk.f32.gmra.mxu2 %vm401_vm1, %v396_v20  ;;  %1507 = vmatmul.msk.f32.gmra.mxu3 %vm401_vm1, %v396_v20 }
 0x224   : > { %v2061_v21 = vpop.f32.mrf.mxu2  ;;  %v2063_v22 = vpop.f32.mrf.mxu3 }
 0x225   : > { %v757_v23 = vmax.f32 %v2061_v21, %v2063_v22 }
 0x227   : > { %758 = vmax.xlane.f32.xlu2 %v757_v23 }
 0x228   : > { %v397_v24 = vpop.trf.xlu1 }
 0x229   : > { %1476 = vmatmul.msk.f32.gmra.mxu2 %vm401_vm1, %v397_v24  ;;  %1508 = vmatmul.msk.f32.gmra.mxu3 %vm401_vm1, %v397_v24 }
 0x22c   : > { %v2069_v25 = vpop.f32.mrf.mxu2  ;;  %v2071_v26 = vpop.f32.mrf.mxu3 }
 0x22d   : > { %v760_v27 = vmax.f32 %v2069_v25, %v2071_v26 }
 0x22f   : > { %761 = vmax.xlane.f32.xlu2 %v760_v27 }
 0x234   : > { %v2075_v28 = vpop.f32.mrf.mxu2  ;;  %v2077_v29 = vpop.f32.mrf.mxu3 }
 0x235   : > { %v763_v30 = vmax.f32 %v2075_v28, %v2077_v29 }
 0x237   : > { %764 = vmax.xlane.f32.xlu0 %v763_v30 }
 0x23c   : > { %v2081_v31 = vpop.f32.mrf.mxu2  ;;  %v2083_v32 = vpop.f32.mrf.mxu3 }
 0x23d   : > { %2813 = vst [vmem:[#allocation7_spill] sm:$0xff] %v2081_v31  ;;  %v766_v33 = vmax.f32 %v2081_v31, %v2083_v32 }
 0x23e   : > { %2814 = vst [vmem:[#allocation8_spill] sm:$0xff] %v2083_v32 }
 0x23f   : > { %767 = vmax.xlane.f32.xlu2 %v766_v33 }
 0x242   : > { %v2093_v37 = vpop.xlane.xlu2 %725 }
 0x244   : > { %v2087_v34 = vpop.f32.mrf.mxu2  ;;  %v2089_v35 = vpop.f32.mrf.mxu3 }
 0x245   : > { %v769_v36 = vmax.f32 %v2087_v34, %v2089_v35 }
 0x247   : > { %770 = vmax.xlane.f32.xlu2 %v769_v36 }
 0x24c   : > { %v2095_v38 = vpop.f32.mrf.mxu2  ;;  %v2097_v39 = vpop.f32.mrf.mxu3 }
 0x252   : > { %v2099_v40 = vpop.xlane.xlu2 %731 }
 0x254   : > { %v2101_v43 = vpop.f32.mrf.mxu2  ;;  %v2103_v44 = vpop.f32.mrf.mxu3 }
 0x255   : > { %2815 = vst [vmem:[#allocation9_spill] sm:$0xff] %v2101_v43 }
 0x256   : > { %2816 = vst [vmem:[#allocation10_spill] sm:$0xff] %v2103_v44 }
 0x25a   : > { %v2105_v47 = vpop.xlane.xlu2 %734 }
 0x25c   : > { %v2107_v48 = vpop.f32.mrf.mxu2  ;;  %v2109_v51 = vpop.f32.mrf.mxu3 }
 0x262   : > { %v2111_v52 = vpop.xlane.xlu2 %737 }
 0x264   : > { %v2113_v55 = vpop.f32.mrf.mxu2  ;;  %v2115_v56 = vpop.f32.mrf.mxu3 }
 0x26a   : > { %v2117_v59 = vpop.xlane.xlu2 %740 }
 0x26c   : > { %v2119_v60 = vpop.f32.mrf.mxu2  ;;  %v2121_v63 = vpop.f32.mrf.mxu3 }
 0x272   : > { %v2123_v0 = vpop.xlane.xlu2 %743 }
 0x274   : > { %v2125_v3 = vpop.f32.mrf.mxu2  ;;  %v2127_v4 = vpop.f32.mrf.mxu3 }
 0x27a   : > { %v2129_v7 = vpop.xlane.xlu2 %746 }
 0x27c   : > { %v2131_v8 = vpop.f32.mrf.mxu2  ;;  %v2133_v11 = vpop.f32.mrf.mxu3 }
 0x27d   : > { %2817 = vst [vmem:[#allocation11_spill] sm:$0xff] %v2131_v8  ;;  %v790_v31 = vmax.f32 %v2131_v8, %v2133_v11 }
 0x27e   : > { %2818 = vst [vmem:[#allocation12_spill] sm:$0xff] %v2133_v11 }
 0x282   : > { %v2135_v12 = vpop.xlane.xlu2 %749 }
 0x284   : > { %v2137_v15 = vpop.f32.mrf.mxu2  ;;  %v2139_v16 = vpop.f32.mrf.mxu3 }
 0x285   : > { %2819 = vst [vmem:[#allocation13_spill] sm:$0xff] %v2137_v15  ;;  %v793_v19 = vmax.f32 %v2137_v15, %v2139_v16 }
 0x286   : > { %2820 = vst [vmem:[#allocation14_spill] sm:$0xff] %v2139_v16 }
 0x287   : > { %794 = vmax.xlane.f32.xlu0 %v793_v19 }
 0x28a   : > { %v2143_v20 = vpop.xlane.xlu2 %752 }
 0x28c   : > { %v2145_v23 = vpop.f32.mrf.mxu2  ;;  %v2147_v24 = vpop.f32.mrf.mxu3 }
 0x28d   : > { %2821 = vst [vmem:[#allocation15_spill] sm:$0xff] %v2145_v23  ;;  %v796_v27 = vmax.f32 %v2145_v23, %v2147_v24 }
 0x28e   : > { %2822 = vst [vmem:[#allocation16_spill] sm:$0xff] %v2147_v24  ;;  %v398_v24 = vpop.trf.xlu1 }
 0x28f   : > { %797 = vmax.xlane.f32.xlu0 %v796_v27  ;;  %1477 = vmatmul.msk.f32.gmra.mxu2 %vm401_vm1, %v398_v24 }
 0x290   : > { %1509 = vmatmul.msk.f32.gmra.mxu3 %vm401_vm1, %v398_v24 }
 0x292   : > { %v756_v30 = vpop.xlane.xlu2 %755 }
 0x294   : > { %v2151_v33 = vpop.f32.mrf.mxu2  ;;  %v2153_v36 = vpop.f32.mrf.mxu3 }
 0x295   : > { %2823 = vst [vmem:[#allocation17_spill] sm:$0xff] %v2151_v33  ;;  %v799_v32 = vmax.f32 %v2151_v33, %v2153_v36 }
 0x296   : > { %2824 = vst [vmem:[#allocation18_spill] sm:$0xff] %v2153_v36 }
 0x297   : > { %800 = vmax.xlane.f32.xlu2 %v799_v32 }
 0x29a   : > { %v759_v19 = vpop.xlane.xlu2 %758 }
 0x29b   : > { %v842_v32 = vsub.f32 %v2061_v21, %v759_v19  ;;  %v843_v42 = vsub.f32 %v2063_v22, %v759_v19  ;;  %v840_v22 = vsub.f32 %v2053_v17, %v756_v30 }
 0x29c   : > { %v2157_v16 = vpop.f32.mrf.mxu2  ;;  %v2159_v15 = vpop.f32.mrf.mxu3 }
 0x29d   : > { %2825 = vst [vmem:[#allocation19_spill] sm:$0xff] %v2157_v16  ;;  %v802_v27 = vmax.f32 %v2157_v16, %v2159_v15  ;;  %v928_v16 = vmul.f32 1.442695, %v842_v32  ;;  %v930_v21 = vmul.f32 1.442695, %v843_v42  ;;  %v784_v42 = vmax.f32 %v2119_v60, %v2121_v63 }
 0x29e   : > { %2826 = vst [vmem:[#allocation20_spill] sm:$0xff] %v2159_v15  ;;  %v787_v15 = vmax.f32 %v2125_v3, %v2127_v4  ;;  %v924_v32 = vmul.f32 1.442695, %v840_v22  ;;  %v781_v22 = vmax.f32 %v2113_v55, %v2115_v56 }
 0x29f   : > { %791 = vmax.xlane.f32.xlu2 %v790_v31  ;;  %803 = vmax.xlane.f32.xlu0 %v802_v27 }
 0x2a2   : > { %v762_v36 = vpop.xlane.xlu2 %761 }
 0x2a3   : > { %v844_v33 = vsub.f32 %v2069_v25, %v762_v36  ;;  %v845_v23 = vsub.f32 %v2071_v26, %v762_v36  ;;  %v399_v25 = vpop.trf.xlu1  ;;  %v841_v26 = vsub.f32 %v2055_v18, %v756_v30  ;;  %v832_v30 = vsub.f32 %v2021_v1, %v2123_v0 }
 0x2a4   : > { %v2171_v11 = vpop.f32.mrf.mxu2  ;;  %v2173_v8 = vpop.f32.mrf.mxu3  ;;  %1478 = vmatmul.msk.f32.gmra.mxu2 %vm401_vm1, %v399_v25  ;;  %1510 = vmatmul.msk.f32.gmra.mxu3 %vm401_vm1, %v399_v25 }
 0x2a5   : > { %v932_v31 = vmul.f32 1.442695, %v844_v33  ;;  %v934_v27 = vmul.f32 1.442695, %v845_v23  ;;  %v805_v24 = vmax.f32 %v2171_v11, %v2173_v8  ;;  %v926_v18 = vmul.f32 1.442695, %v841_v26 }
 0x2a6   : > { %v908_v25 = vmul.f32 1.442695, %v832_v30 }
 0x2a7   : > { %1565 = vpow2.f32 %v932_v31  ;;  %788 = vmax.xlane.f32.xlu2 %v787_v15  ;;  %806 = vmax.xlane.f32.xlu0 %v805_v24  ;;  %v838_v24 = vsub.f32 %v2045_v13, %v2143_v20 }
 0x2a8   : > { %1567 = vpow2.f32 %v934_v27  ;;  %v833_v27 = vsub.f32 %v2023_v2, %v2123_v0  ;;  %v2213_v0 = vpop.xlane.xlu0 %728 }
 0x2a9   : > { %1569 = vpow2.f32 %v928_v16 }
 0x2aa   : > { %1571 = vpow2.f32 %v930_v21  ;;  %v839_v21 = vsub.f32 %v2047_v14, %v2143_v20  ;;  %v910_v26 = vmul.f32 1.442695, %v833_v27 }
 0x2ab   : > { %1573 = vpow2.f32 %v924_v32  ;;  %v400_v2 = vpop.trf.xlu1  ;;  %v837_v32 = vsub.f32 %v2039_v10, %v2135_v12  ;;  %v834_v10 = vsub.f32 %v2029_v5, %v2129_v7 }
 0x2ac   : > { %v2183_v23 = vpop.f32.mrf.mxu2  ;;  %v2185_v33 = vpop.f32.mrf.mxu3  ;;  %1575 = vpow2.f32 %v926_v18  ;;  %v922_v13 = vmul.f32 1.442695, %v839_v21  ;;  %1479 = vmatmul.msk.f32.gmra.mxu2 %vm401_vm1, %v400_v2  ;;  %1511 = vmatmul.msk.f32.gmra.mxu3 %vm401_vm1, %v400_v2 }
 0x2ad   : > { %v2187_v36 = vpop.eup %1565  ;;  %v808_v15 = vmax.f32 %v2183_v23, %v2185_v33  ;;  %1577 = vpow2.f32 %v908_v25  ;;  %v912_v2 = vmul.f32 1.442695, %v834_v10 }
 0x2ae   : > { %v2193_v19 = vpop.eup %1567  ;;  %1579 = vpow2.f32 %v910_v26 }
 0x2af   : > { %785 = vmax.xlane.f32.xlu2 %v784_v42  ;;  %809 = vmax.xlane.f32.xlu0 %v808_v15  ;;  %v1048_v17 = vadd.f32 %v2193_v19, %v2187_v36  ;;  %v2197_v16 = vpop.eup %1569  ;;  %v920_v42 = vmul.f32 1.442695, %v838_v24  ;;  %v836_v15 = vsub.f32 %v2037_v9, %v2135_v12  ;;  %v918_v9 = vmul.f32 1.442695, %v837_v32 }
 0x2b0   : > { %v2201_v31 = vpop.eup %1571  ;;  %v765_v25 = vpop.xlane.xlu0 %764 }
 0x2b1   : > { %1049 = vadd.xlane.f32.xlu1 %v1048_v17  ;;  %v1045_v1 = vadd.f32 %v2201_v31, %v2197_v16  ;;  %v2217_v14 = vpop.eup %1573  ;;  %1581 = vpow2.f32 %v920_v42  ;;  %v778_v17 = vmax.f32 %v2107_v48, %v2109_v51  ;;  %v916_v24 = vmul.f32 1.442695, %v836_v15 }
 0x2b2   : > { %v2219_v20 = vpop.eup %1575  ;;  %1583 = vpow2.f32 %v922_v13  ;;  %v2229_v30 = vpop.xlane.xlu2 %767  ;;  %v846_v26 = vsub.f32 %v2075_v28, %v765_v25  ;;  %v847_v42 = vsub.f32 %v2077_v29, %v765_v25 }
 0x2b3   : > { %v1042_v18 = vadd.f32 %v2219_v20, %v2217_v14  ;;  %v2231_v27 = vpop.eup %1577  ;;  %1585 = vpow2.f32 %v916_v24  ;;  %v772_v24 = vmax.f32 %v2095_v38, %v2097_v39 }
 0x2b4   : > { %v2233_v21 = vpop.eup %1579  ;;  %1587 = vpow2.f32 %v918_v9  ;;  %v936_v5 = vmul.f32 1.442695, %v846_v26 }
 0x2b5   : > { %v1030_v13 = vadd.f32 %v2233_v21, %v2231_v27  ;;  %1589 = vpow2.f32 %v912_v2  ;;  %v831_v2 = vsub.f32 %v2015_v62, %v2117_v59  ;;  %v829_v62 = vsub.f32 %v2007_v58, %v2111_v52 }
 0x2b6   : > { %v827_v58 = vsub.f32 %v1999_v54, %v2105_v47 }
 0x2b7   : > { %782 = vmax.xlane.f32.xlu2 %v781_v22  ;;  %1046 = vadd.xlane.f32.xlu0 %v1045_v1  ;;  %v2235_v22 = vpop.eup %1581  ;;  %v835_v1 = vsub.f32 %v2031_v6, %v2129_v7 }
 0x2b8   : > { %v2239_v12 = vpop.eup %1583 }
 0x2b9   : > { %v1039_v15 = vadd.f32 %v2239_v12, %v2235_v22  ;;  %v914_v32 = vmul.f32 1.442695, %v835_v1  ;;  %v2249_v6 = vpop.eup %1585 }
 0x2ba   : > { %v2251_v28 = vpop.eup %1587 }
 0x2bb   : > { %1591 = vpow2.f32 %v914_v32  ;;  %v1036_v9 = vadd.f32 %v2251_v28, %v2249_v6  ;;  %v2259_v25 = vpop.eup %1589 }
 0x2bc   : > { %1593 = vpow2.f32 %v936_v5  ;;  %v906_v5 = vmul.f32 1.442695, %v831_v2 }
 0x2bf   : > { %779 = vmax.xlane.f32.xlu2 %v778_v17  ;;  %1043 = vadd.xlane.f32.xlu0 %v1042_v18  ;;  %v938_v17 = vmul.f32 1.442695, %v847_v42  ;;  %v771_v18 = vpop.xlane.xlu2 %770 }
 0x2c0   : > { %v850_v29 = vsub.f32 %v2087_v34, %v771_v18  ;;  %v851_v7 = vsub.f32 %v2089_v35, %v771_v18  ;;  %v830_v35 = vsub.f32 %v2013_v61, %v2117_v59  ;;  %v828_v61 = vsub.f32 %v2005_v57, %v2111_v52 }
 0x2c1   : > { %1595 = vpow2.f32 %v938_v17  ;;  %v2261_v1 = vpop.eup %1591  ;;  %v826_v57 = vsub.f32 %v1997_v53, %v2105_v47  ;;  %v825_v53 = vsub.f32 %v1991_v50, %v2099_v40 }
 0x2c2   : > { %v944_v10 = vmul.f32 1.442695, %v850_v29  ;;  %v946_v26 = vmul.f32 1.442695, %v851_v7  ;;  %v2263_v42 = vpop.eup %1593  ;;  %v904_v32 = vmul.f32 1.442695, %v830_v35  ;;  %v775_v29 = vmax.f32 %v2101_v43, %v2103_v44 }
 0x2c3   : > { %v900_v7 = vmul.f32 1.442695, %v828_v61  ;;  %v898_v35 = vmul.f32 1.442695, %v827_v58  ;;  %v2833_v43 = vld [vmem:[#allocation11_spill] sm:$0xff] }
 0x2c4   : > { %1597 = vpow2.f32 %v944_v10 }
 0x2c5   : > { %1599 = vpow2.f32 %v946_v26  ;;  %v896_v26 = vmul.f32 1.442695, %v826_v57 }
 0x2c6   : > { %1601 = vpow2.f32 %v904_v32  ;;  %v894_v32 = vmul.f32 1.442695, %v825_v53 }
 0x2c7   : > { %1031 = vadd.xlane.f32.xlu2 %v1030_v13  ;;  %1040 = vadd.xlane.f32.xlu0 %v1039_v15  ;;  %v2265_v34 = vpop.eup %1595  ;;  %v1033_v15 = vadd.f32 %v2261_v1, %v2259_v25  ;;  %1603 = vpow2.f32 %v906_v5 }
 0x2c8   : > { %v1051_v13 = vadd.f32 %v2265_v34, %v2263_v42  ;;  %1605 = vpow2.f32 %v900_v7 }
 0x2ca   : > { %v2275_v17 = vpop.eup %1597 }
 0x2cb   : > { %v2277_v18 = vpop.eup %1599 }
 0x2cc   : > { %v1057_v59 = vadd.f32 %v2277_v18, %v2275_v17 }
 0x2cf   : > { %773 = vmax.xlane.f32.xlu2 %v772_v24  ;;  %1037 = vadd.xlane.f32.xlu0 %v1036_v9  ;;  %v902_v24 = vmul.f32 1.442695, %v829_v62  ;;  %v2287_v9 = vpop.eup %1601  ;;  %v822_v62 = vsub.f32 %v1981_v45, %v2213_v0  ;;  %v820_v45 = vsub.f32 %v1973_v41, %v2093_v37 }
 0x2d0   : > { %v2289_v10 = vpop.eup %1603 }
 0x2d1   : > { %1607 = vpow2.f32 %v902_v24  ;;  %v1027_v52 = vadd.f32 %v2289_v10, %v2287_v9  ;;  %v2297_v2 = vpop.eup %1605  ;;  %v208_v24 = vld [vmem:[%s2767_s1 + $0x10] sm:$0xff]  ;;  %v884_v58 = vmul.f32 1.442695, %v820_v45 }
 0x2d2   : > { %1609 = vpow2.f32 %v896_v26  ;;  %1438 = vmatmul.msk.f32.gmra.mxu0 %vm248_vm0, %v208_v24  ;;  %1444 = vmatmul.msk.f32.gmra.mxu1 %vm248_vm0, %v208_v24 }
 0x2d3   : > { %1611 = vpow2.f32 %v898_v35 }
 0x2d7   : > { %1052 = vadd.xlane.f32.xlu2 %v1051_v13  ;;  %1034 = vadd.xlane.f32.xlu0 %v1033_v15  ;;  %v2299_v13 = vpop.eup %1607  ;;  %v824_v15 = vsub.f32 %v1989_v49, %v2099_v40  ;;  %v823_v49 = vsub.f32 %v1983_v46, %v2213_v0  ;;  %v888_v40 = vmul.f32 1.442695, %v822_v62  ;;  %v2827_v46 = vld [vmem:[#allocation6_spill] sm:$0xff] }
 0x2d8   : > { %v1024_v54 = vadd.f32 %v2299_v13, %v2297_v2  ;;  %v2307_v5 = vpop.eup %1609  ;;  %v821_v0 = vsub.f32 %v2827_v46, %v2093_v37 }
 0x2d9   : > { %v892_v47 = vmul.f32 1.442695, %v824_v15  ;;  %v2309_v61 = vpop.eup %1611 }
 0x2da   : > { %v1021_v50 = vadd.f32 %v2309_v61, %v2307_v5 }
 0x2db   : > { %1613 = vpow2.f32 %v892_v47 }
 0x2dc   : > { %1615 = vpow2.f32 %v894_v32 }
 0x2dd   : > { %1617 = vpow2.f32 %v888_v40 }
 0x2df   : > { %1058 = vadd.xlane.f32.xlu2 %v1057_v59  ;;  %776 = vmax.xlane.f32.xlu0 %v775_v29  ;;  %v890_v59 = vmul.f32 1.442695, %v823_v49 }
 0x2e1   : > { %v2317_v29 = vpop.eup %1613  ;;  %1619 = vpow2.f32 %v890_v59 }
 0x2e2   : > { %v2319_v7 = vpop.eup %1615  ;;  %1621 = vpow2.f32 %v884_v58 }
 0x2e3   : > { %v1018_v57 = vadd.f32 %v2319_v7, %v2317_v29  ;;  %v2332_v26 = vpop.eup %1617 }
 0x2e4   : > { %2828 = vst [vmem:[#allocation6_spill] sm:$0xff] %v2332_v26 }
 0x2e7   : > { %1028 = vadd.xlane.f32.xlu0 %v1027_v52  ;;  %v886_v52 = vmul.f32 1.442695, %v821_v0  ;;  %v2334_v35 = vpop.eup %1619 }
 0x2e8   : > { %2829 = vst [vmem:[#allocation21_spill] sm:$0xff] %v2334_v35  ;;  %v1015_v41 = vadd.f32 %v2334_v35, %v2332_v26  ;;  %v2338_v15 = vpop.eup %1621 }
 0x2e9   : > { %1623 = vpow2.f32 %v886_v52  ;;  %2830 = vst [vmem:[#allocation22_spill] sm:$0xff] %v2338_v15 }
 0x2ef   : > { %1025 = vadd.xlane.f32.xlu0 %v1024_v54  ;;  %v2340_v37 = vpop.eup %1623 }
 0x2f0   : > { %2831 = vst [vmem:[#allocation23_spill] sm:$0xff] %v2340_v37  ;;  %v1012_v54 = vadd.f32 %v2340_v37, %v2338_v15  ;;  %v2849_v15 = vld [vmem:[#allocation8_spill] sm:$0xff] }
 0x2f1   : > { %v849_v35 = vsub.f32 %v2849_v15, %v2229_v30 }
 0x2f7   : > { %1022 = vadd.xlane.f32.xlu0 %v1021_v50  ;;  %v214_v50 = vld [vmem:[%s2768_s2 + $0x10] sm:$0xff] }
 0x2fa   : > { %v2344_v47 = vpop.xlane.xlu0 %794 }
 0x2ff   : > { %1019 = vadd.xlane.f32.xlu0 %v1018_v57 }
 0x302   : > { %v798_v49 = vpop.xlane.xlu0 %797 }
 0x307   : > { %1016 = vadd.xlane.f32.xlu0 %v1015_v41 }
 0x30a   : > { %v801_v53 = vpop.xlane.xlu2 %800 }
 0x30f   : > { %1013 = vadd.xlane.f32.xlu0 %v1012_v54 }
 0x312   : > { %v792_v32 = vpop.xlane.xlu2 %791  ;;  %v804_v45 = vpop.xlane.xlu0 %803 }
 0x31a   : > { %v789_v62 = vpop.xlane.xlu2 %788 }
 0x31b   : > { %v862_v46 = vsub.f32 %v2125_v3, %v789_v62  ;;  %v863_v58 = vsub.f32 %v2127_v4, %v789_v62  ;;  %v2361_v3 = vpop.xlane.xlu0 %806 }
 0x31d   : > { %v968_v52 = vmul.f32 1.442695, %v862_v46  ;;  %v970_v41 = vmul.f32 1.442695, %v863_v58  ;;  %v2839_v58 = vld [vmem:[#allocation16_spill] sm:$0xff] }
 0x322   : > { %v786_v40 = vpop.xlane.xlu2 %785 }
 0x323   : > { %v860_v59 = vsub.f32 %v2119_v60, %v786_v40  ;;  %v861_v24 = vsub.f32 %v2121_v63, %v786_v40  ;;  %230 = vperm.xlu0 %1562, %v214_v50   ;;  %v864_v60 = vsub.f32 %v2833_v43, %v792_v32  ;;  %v2835_v50 = vld [vmem:[#allocation12_spill] sm:$0xff]  ;;  %v2838_v43 = vld [vmem:[#allocation15_spill] sm:$0xff] }
 0x324   : > { %v865_v40 = vsub.f32 %v2835_v50, %v792_v32  ;;  %v869_v32 = vsub.f32 %v2839_v58, %v798_v49 }
 0x325   : > { %v964_v0 = vmul.f32 1.442695, %v860_v59  ;;  %v966_v57 = vmul.f32 1.442695, %v861_v24  ;;  %v972_v62 = vmul.f32 1.442695, %v864_v60 }
 0x326   : > { %v974_v59 = vmul.f32 1.442695, %v865_v40  ;;  %v982_v50 = vmul.f32 1.442695, %v869_v32 }
 0x327   : > { %1625 = vpow2.f32 %v964_v0 }
 0x328   : > { %1627 = vpow2.f32 %v966_v57  ;;  %v868_v57 = vsub.f32 %v2838_v43, %v798_v49  ;;  %v2842_v43 = vld [vmem:[#allocation17_spill] sm:$0xff]  ;;  %v2843_v49 = vld [vmem:[#allocation18_spill] sm:$0xff] }
 0x329   : > { %1629 = vpow2.f32 %v968_v52 }
 0x32a   : > { %v2353_v54 = vpop.xlane.xlu2 %782  ;;  %1631 = vpow2.f32 %v970_v41  ;;  %v2375_v41 = vpop.xlane.xlu0 %809  ;;  %v980_v60 = vmul.f32 1.442695, %v868_v57 }
 0x32b   : > { %1633 = vpow2.f32 %v972_v62  ;;  %v870_v62 = vsub.f32 %v2842_v43, %v801_v53  ;;  %v2397_v43 = vpop.f32.mrf.mxu3 }
 0x32c   : > { %1635 = vpow2.f32 %v974_v59  ;;  %v871_v59 = vsub.f32 %v2843_v49, %v801_v53  ;;  %v2846_v53 = vld [vmem:[#allocation19_spill] sm:$0xff]  ;;  %v2847_v49 = vld [vmem:[#allocation20_spill] sm:$0xff] }
 0x32d   : > { %v2355_v44 = vpop.eup %1625  ;;  %1637 = vpow2.f32 %v980_v60  ;;  %v2395_v60 = vpop.f32.mrf.mxu2 }
 0x32e   : > { %2832 = vst [vmem:[#allocation24_spill] sm:$0xff] %v2355_v44  ;;  %v2358_v63 = vpop.eup %1627  ;;  %1639 = vpow2.f32 %v982_v50  ;;  %v986_v57 = vmul.f32 1.442695, %v871_v59  ;;  %v872_v50 = vsub.f32 %v2846_v53, %v804_v45  ;;  %v811_v37 = vmax.f32 %v2395_v60, %v2397_v43 }
 0x32f   : > { %2834 = vst [vmem:[#allocation11_spill] sm:$0xff] %v2358_v63  ;;  %v1072_v4 = vadd.f32 %v2358_v63, %v2355_v44  ;;  %v2367_v46 = vpop.eup %1629  ;;  %v984_v44 = vmul.f32 1.442695, %v870_v62  ;;  %v873_v62 = vsub.f32 %v2847_v49, %v804_v45 }
 0x330   : > { %2836 = vst [vmem:[#allocation12_spill] sm:$0xff] %v2367_v46  ;;  %v2369_v0 = vpop.eup %1631 }
 0x331   : > { %1073 = vadd.xlane.f32.xlu2 %v1072_v4  ;;  %2837 = vst [vmem:[#allocation25_spill] sm:$0xff] %v2369_v0  ;;  %v1075_v52 = vadd.f32 %v2369_v0, %v2367_v46  ;;  %v2379_v4 = vpop.eup %1633  ;;  %1641 = vpow2.f32 %v984_v44  ;;  %v990_v44 = vmul.f32 1.442695, %v873_v62 }
 0x332   : > { %v2365_v24 = vpop.xlane.xlu2 %779  ;;  %2840 = vst [vmem:[#allocation15_spill] sm:$0xff] %v2379_v4  ;;  %v2381_v63 = vpop.eup %1635  ;;  %1643 = vpow2.f32 %v986_v57 }
 0x333   : > { %2841 = vst [vmem:[#allocation16_spill] sm:$0xff] %v2381_v63  ;;  %v1078_v58 = vadd.f32 %v2381_v63, %v2379_v4  ;;  %v2391_v0 = vpop.eup %1637  ;;  %v988_v4 = vmul.f32 1.442695, %v872_v50  ;;  %v874_v50 = vsub.f32 %v2171_v11, %v2361_v3  ;;  %v2423_v62 = vpop.f32.mrf.mxu3 }
 0x334   : > { %2844 = vst [vmem:[#allocation17_spill] sm:$0xff] %v2391_v0  ;;  %v2393_v46 = vpop.eup %1639 }
 0x335   : > { %2845 = vst [vmem:[#allocation18_spill] sm:$0xff] %v2393_v46  ;;  %v1084_v59 = vadd.f32 %v2393_v46, %v2391_v0  ;;  %1645 = vpow2.f32 %v988_v4  ;;  %v2421_v15 = vpop.f32.mrf.mxu2  ;;  %v992_v46 = vmul.f32 1.442695, %v874_v50  ;;  %v877_v4 = vsub.f32 %v2185_v33, %v2375_v41 }
 0x336   : > { %1647 = vpow2.f32 %v990_v44 }
 0x337   : > { %v2411_v57 = vpop.eup %1641 }
 0x338   : > { %2850 = vst [vmem:[#allocation19_spill] sm:$0xff] %v2411_v57  ;;  %v2413_v45 = vpop.eup %1643 }
 0x339   : > { %1076 = vadd.xlane.f32.xlu2 %v1075_v52  ;;  %v2387_v52 = vpop.xlane.xlu0 %1046  ;;  %2851 = vst [vmem:[#allocation20_spill] sm:$0xff] %v2413_v45 }
 0x33a   : > { %v2377_v40 = vpop.xlane.xlu2 %1031 }
 0x341   : > { %1079 = vadd.xlane.f32.xlu2 %v1078_v58  ;;  %v2848_v58 = vld [vmem:[#allocation7_spill] sm:$0xff]  ;;  %v2415_v53 = vpop.xlane.xlu0 %1043 }
 0x342   : > { %v2389_v32 = vpop.xlane.xlu2 %773  ;;  %v848_v63 = vsub.f32 %v2848_v58, %v2229_v30  ;;  %v875_v30 = vsub.f32 %v2173_v8, %v2361_v3  ;;  %v1087_v58 = vadd.f32 %v2413_v45, %v2411_v57  ;;  %v876_v3 = vsub.f32 %v2183_v23, %v2375_v41  ;;  %v2855_v23 = vld [vmem:[#allocation14_spill] sm:$0xff] }
 0x344   : > { %v940_v49 = vmul.f32 1.442695, %v848_v63  ;;  %v814_v63 = vmax.f32 %v2421_v15, %v2423_v62  ;;  %v994_v11 = vmul.f32 1.442695, %v875_v30 }
 0x346   : > { %1649 = vpow2.f32 %v940_v49 }
 0x349   : > { %1085 = vadd.xlane.f32.xlu2 %v1084_v59  ;;  %v942_v59 = vmul.f32 1.442695, %v849_v35  ;;  %v2437_v44 = vpop.xlane.xlu0 %1040 }
 0x34a   : > { %v2409_v26 = vpop.xlane.xlu2 %1052 }
 0x34b   : > { %1651 = vpow2.f32 %v942_v59 }
 0x34d   : > { %812 = vmax.xlane.f32.xlu0 %v811_v37  ;;  %v2429_v37 = vpop.eup %1645 }
 0x34e   : > { %2852 = vst [vmem:[#allocation7_spill] sm:$0xff] %v2429_v37  ;;  %v2431_v8 = vpop.eup %1647 }
 0x34f   : > { %2853 = vst [vmem:[#allocation8_spill] sm:$0xff] %v2431_v8  ;;  %v2439_v49 = vpop.eup %1649  ;;  %v1090_v50 = vadd.f32 %v2431_v8, %v2429_v37 }
 0x351   : > { %1088 = vadd.xlane.f32.xlu2 %v1087_v58  ;;  %v2443_v59 = vpop.eup %1651 }
 0x352   : > { %v1059_v35 = vpop.xlane.xlu2 %1058  ;;  %v1054_v45 = vadd.f32 %v2443_v59, %v2439_v49 }
 0x353   : > { %1653 = vrcp.f32 %v1059_v35  ;;  %v996_v35 = vmul.f32 1.442695, %v876_v3 }
 0x354   : > { %1655 = vpow2.f32 %v992_v46  ;;  %v2854_v46 = vld [vmem:[#allocation13_spill] sm:$0xff] }
 0x355   : > { %815 = vmax.xlane.f32.xlu0 %v814_v63  ;;  %1657 = vpow2.f32 %v994_v11  ;;  %v866_v58 = vsub.f32 %v2854_v46, %v2344_v47  ;;  %v867_v63 = vsub.f32 %v2855_v23, %v2344_v47  ;;  %v998_v11 = vmul.f32 1.442695, %v877_v4  ;;  %v2457_v47 = vpop.f32.mrf.mxu2  ;;  %v2459_v4 = vpop.f32.mrf.mxu3 }
 0x356   : > { %1659 = vpow2.f32 %v996_v35 }
 0x357   : > { %v976_v46 = vmul.f32 1.442695, %v866_v58  ;;  %v978_v3 = vmul.f32 1.442695, %v867_v63  ;;  %1661 = vpow2.f32 %v998_v11 }
 0x359   : > { %v1654_v30 = vpop.eup %1653  ;;  %1091 = vadd.xlane.f32.xlu2 %v1090_v50  ;;  %1663 = vpow2.f32 %v976_v46  ;;  %v817_v50 = vmax.f32 %v2457_v47, %v2459_v4 }
 0x35a   : > { %v1170_v33 = vmul.f32 %v1654_v30, %v2275_v17  ;;  %v1171_v41 = vmul.f32 %v1654_v30, %v2277_v18  ;;  %v2451_v0 = vpop.eup %1655  ;;  %v2463_v18 = vpop.xlane.xlu0 %1037  ;;  %1665 = vpow2.f32 %v978_v3 }
 0x35b   : > { %2856 = vst [vmem:[#allocation13_spill] sm:$0xff] %v2451_v0  ;;  %v2455_v57 = vpop.eup %1657 }
 0x35c   : > { %2857 = vst [vmem:[#allocation14_spill] sm:$0xff] %v2455_v57  ;;  %1204 = vmatpush.xpose.msrb.mxu0 %v1170_v33  ;;  %1233 = vmatpush.xpose.msrb.mxu1 %v1171_v41  ;;  %v1093_v17 = vadd.f32 %v2455_v57, %v2451_v0  ;;  %v2467_v30 = vpop.eup %1659  ;;  %v858_v57 = vsub.f32 %v2113_v55, %v2353_v54 }
 0x35d   : > { %1055 = vadd.xlane.f32.xlu0 %v1054_v45  ;;  %2858 = vst [vmem:[#allocation26_spill] sm:$0xff] %v2467_v30  ;;  %v2469_v45 = vpop.eup %1661 }
 0x35e   : > { %2859 = vst [vmem:[#allocation27_spill] sm:$0xff] %v2469_v45  ;;  %v1096_v35 = vadd.f32 %v2469_v45, %v2467_v30  ;;  %v859_v30 = vsub.f32 %v2115_v56, %v2353_v54 }
 0x35f   : > { %v2471_v58 = vpop.eup %1663 }
 0x360   : > { %2860 = vst [vmem:[#allocation28_spill] sm:$0xff] %v2471_v58  ;;  %v2475_v23 = vpop.eup %1665 }
 0x361   : > { %1094 = vadd.xlane.f32.xlu2 %v1093_v17  ;;  %2861 = vst [vmem:[#allocation29_spill] sm:$0xff] %v2475_v23  ;;  %v1081_v11 = vadd.f32 %v2475_v23, %v2471_v58 }
 0x362   : > { %v2477_v63 = vpop.xlane.xlu0 %1034 }
 0x365   : > { %818 = vmax.xlane.f32.xlu0 %v817_v50 }
 0x369   : > { %1097 = vadd.xlane.f32.xlu2 %v1096_v35 }
 0x36a   : > { %v2481_v33 = vpop.xlane.xlu0 %776 }
 0x36b   : > { %2862 = vst [vmem:[#allocation30_spill] sm:$0xff] %v2481_v33  ;;  %v210_v33 = vld [vmem:[%s2767_s1 + $0x20] sm:$0xff] }
 0x36d   : > { %1082 = vadd.xlane.f32.xlu0 %v1081_v11  ;;  %v209_v11 = vld [vmem:[%s2767_s1 + $0x18] sm:$0xff] }
 0x36e   : > { %1439 = vmatmul.msk.f32.gmra.mxu0 %vm248_vm0, %v209_v11  ;;  %1445 = vmatmul.msk.f32.gmra.mxu1 %vm248_vm0, %v209_v11  ;;  %v960_v11 = vmul.f32 1.442695, %v858_v57 }
 0x372   : > { %v2483_v41 = vpop.xlane.xlu0 %1028 }
 0x376   : > { %1440 = vmatmul.msk.f32.gmra.mxu0 %vm248_vm0, %v210_v33  ;;  %1446 = vmatmul.msk.f32.gmra.mxu1 %vm248_vm0, %v210_v33  ;;  %v1050_v33 = vpop.xlane.xlu1 %1049 }
 0x37a   : > { %v2485_v46 = vpop.xlane.xlu0 %1025 }
 0x382   : > { %v2487_v3 = vpop.xlane.xlu0 %1022 }
 0x38a   : > { %v2489_v17 = vpop.xlane.xlu0 %1019 }
 0x392   : > { %v2491_v50 = vpop.xlane.xlu0 %1016 }
 0x39a   : > { %v2493_v8 = vpop.xlane.xlu0 %1013 }
 0x3a2   : > { %v2495_v35 = vpop.permute.xlu0 %230 }
 0x3c0   : > { %v813_v23 = vpop.xlane.xlu0 %812 }
 0x3c1   : > { %v878_v58 = vsub.f32 %v2395_v60, %v813_v23  ;;  %v879_v37 = vsub.f32 %v2397_v43, %v813_v23  ;;  %v962_v60 = vmul.f32 1.442695, %v859_v30 }
 0x3c3   : > { %v1000_v0 = vmul.f32 1.442695, %v878_v58  ;;  %v1002_v45 = vmul.f32 1.442695, %v879_v37 }
 0x3c5   : > { %1667 = vpow2.f32 %v1000_v0 }
 0x3c6   : > { %1669 = vpow2.f32 %v1002_v45 }
 0x3c7   : > { %1671 = vpow2.f32 %v960_v11 }
 0x3c8   : > { %v816_v43 = vpop.xlane.xlu0 %815  ;;  %1673 = vpow2.f32 %v962_v60 }
 0x3c9   : > { %v880_v55 = vsub.f32 %v2421_v15, %v816_v43  ;;  %v881_v37 = vsub.f32 %v2423_v62, %v816_v43 }
 0x3cb   : > { %v2515_v58 = vpop.eup %1667  ;;  %v1004_v56 = vmul.f32 1.442695, %v880_v55  ;;  %v1006_v54 = vmul.f32 1.442695, %v881_v37 }
 0x3cc   : > { %v2517_v23 = vpop.eup %1669 }
 0x3cd   : > { %1675 = vpow2.f32 %v1004_v56  ;;  %v1099_v0 = vadd.f32 %v2517_v23, %v2515_v58  ;;  %v2521_v30 = vpop.eup %1671 }
 0x3ce   : > { %1677 = vpow2.f32 %v1006_v54  ;;  %v2523_v15 = vpop.eup %1673 }
 0x3cf   : > { %1100 = vadd.xlane.f32.xlu2 %v1099_v0  ;;  %2863 = vst [vmem:[#allocation31_spill] sm:$0xff] %v2523_v15  ;;  %v1069_v11 = vadd.f32 %v2523_v15, %v2521_v30 }
 0x3d0   : > { %v1056_v57 = vpop.xlane.xlu0 %1055 }
 0x3d1   : > { %1679 = vrcp.f32 %v1056_v57 }
 0x3d2   : > { %1681 = vrcp.f32 %v2409_v26 }
 0x3d3   : > { %v2525_v62 = vpop.eup %1675  ;;  %1683 = vrcp.f32 %v1050_v33 }
 0x3d4   : > { %v2528_v45 = vpop.eup %1677  ;;  %1685 = vrcp.f32 %v2387_v52 }
 0x3d5   : > { %v1102_v60 = vadd.f32 %v2528_v45, %v2525_v62 }
 0x3d7   : > { %v1680_v43 = vpop.eup %1679  ;;  %1070 = vadd.xlane.f32.xlu2 %v1069_v11  ;;  %1103 = vadd.xlane.f32.xlu0 %v1102_v60 }
 0x3d8   : > { %v819_v55 = vpop.xlane.xlu0 %818  ;;  %v1168_v37 = vmul.f32 %v1680_v43, %v2439_v49  ;;  %v1169_v56 = vmul.f32 %v1680_v43, %v2443_v59  ;;  %v1682_v54 = vpop.eup %1681 }
 0x3d9   : > { %v882_v26 = vsub.f32 %v2457_v47, %v819_v55  ;;  %v883_v0 = vsub.f32 %v2459_v4, %v819_v55  ;;  %v1166_v33 = vmul.f32 %v1682_v54, %v2263_v42  ;;  %v1167_v11 = vmul.f32 %v1682_v54, %v2265_v34  ;;  %v1684_v60 = vpop.eup %1683 }
 0x3da   : > { %1205 = vmatpush.xpose.msrb.mxu0 %v1168_v37  ;;  %1234 = vmatpush.xpose.msrb.mxu1 %v1169_v56  ;;  %v1164_v49 = vmul.f32 %v1684_v60, %v2187_v36  ;;  %v1165_v59 = vmul.f32 %v1684_v60, %v2193_v19  ;;  %v1686_v47 = vpop.eup %1685  ;;  %v215_v36 = vld [vmem:[%s2768_s2 + $0x18] sm:$0xff] }
 0x3db   : > { %v1008_v57 = vmul.f32 1.442695, %v882_v26  ;;  %v1010_v15 = vmul.f32 1.442695, %v883_v0  ;;  %v1162_v34 = vmul.f32 %v1686_v47, %v2197_v16  ;;  %v1163_v4 = vmul.f32 %v1686_v47, %v2201_v31  ;;  %v211_v31 = vld [vmem:[%s2767_s1 + $0x28] sm:$0xff] }
 0x3dc   : > { %1441 = vmatmul.msk.f32.gmra.mxu0 %vm248_vm0, %v211_v31  ;;  %1447 = vmatmul.msk.f32.gmra.mxu1 %vm248_vm0, %v211_v31  ;;  %v857_v26 = vsub.f32 %v2109_v51, %v2365_v24  ;;  %v2866_v47 = vld [vmem:[#allocation22_spill] sm:$0xff] }
 0x3dd   : > { %1687 = vpow2.f32 %v1008_v57  ;;  %v2870_v31 = vld [vmem:[#allocation10_spill] sm:$0xff] }
 0x3de   : > { %1689 = vpow2.f32 %v1010_v15  ;;  %1206 = vmatpush.xpose.msrb.mxu0 %v1166_v33  ;;  %1235 = vmatpush.xpose.msrb.mxu1 %v1167_v11  ;;  %v2865_v33 = vld [vmem:[#allocation21_spill] sm:$0xff] }
 0x3df   : > { %1691 = vrcp.f32 %v2415_v53 }
 0x3e0   : > { %1693 = vrcp.f32 %v2437_v44 }
 0x3e1   : > { %1695 = vrcp.f32 %v2463_v18 }
 0x3e2   : > { %1207 = vmatpush.xpose.msrb.mxu0 %v1164_v49  ;;  %1236 = vmatpush.xpose.msrb.mxu1 %v1165_v59  ;;  %1697 = vrcp.f32 %v2477_v63  ;;  %v290_v59 = vpop.f32.mrf.mxu0 }
 0x3e3   : > { %v2544_v52 = vpop.eup %1687  ;;  %1699 = vrcp.f32 %v2377_v40 }
 0x3e4   : > { %v2547_v42 = vpop.eup %1689  ;;  %1701 = vrcp.f32 %v2483_v41 }
 0x3e5   : > { %v1692_v15 = vpop.eup %1691  ;;  %v1105_v53 = vadd.f32 %v2547_v42, %v2544_v52  ;;  %1703 = vrcp.f32 %v2485_v46 }
 0x3e6   : > { %1208 = vmatpush.xpose.msrb.mxu0 %v1162_v34  ;;  %1237 = vmatpush.xpose.msrb.mxu1 %v1163_v4  ;;  %v1160_v19 = vmul.f32 %v1692_v15, %v2217_v14  ;;  %v1161_v44 = vmul.f32 %v1692_v15, %v2219_v20  ;;  %v1694_v16 = vpop.eup %1693  ;;  %1705 = vrcp.f32 %v2487_v3  ;;  %v856_v3 = vsub.f32 %v2107_v48, %v2365_v24  ;;  %v325_v4 = vpop.f32.mrf.mxu1 }
 0x3e7   : > { %1106 = vadd.xlane.f32.xlu2 %v1105_v53  ;;  %v1158_v18 = vmul.f32 %v1694_v16, %v2235_v22  ;;  %v1159_v43 = vmul.f32 %v1694_v16, %v2239_v12  ;;  %v1696_v14 = vpop.eup %1695  ;;  %1707 = vrcp.f32 %v2489_v17  ;;  %v2614_v15 = vadd.f32 %v290_v59, %v2495_v35  ;;  %v2871_v59 = vld [vmem:[#allocation26_spill] sm:$0xff] }
 0x3e8   : > { %v1156_v20 = vmul.f32 %v1696_v14, %v2249_v6  ;;  %v1157_v55 = vmul.f32 %v1696_v14, %v2251_v28  ;;  %v1698_v37 = vpop.eup %1697  ;;  %v2576_v28 = vpop.xlane.xlu2 %1073  ;;  %1709 = vrcp.f32 %v2491_v50  ;;  %v956_v0 = vmul.f32 1.442695, %v856_v3 }
 0x3e9   : > { %v1154_v22 = vmul.f32 %v1698_v37, %v2259_v25  ;;  %v1155_v12 = vmul.f32 %v1698_v37, %v2261_v1  ;;  %v1700_v63 = vpop.eup %1699  ;;  %v216_v25 = vld [vmem:[%s2768_s2 + $0x20] sm:$0xff]  ;;  %1711 = vrcp.f32 %v2493_v8  ;;  %v852_v50 = vsub.f32 %v2095_v38, %v2389_v32 }
 0x3ea   : > { %1209 = vmatpush.xpose.msrb.mxu0 %v1160_v19  ;;  %1238 = vmatpush.xpose.msrb.mxu1 %v1161_v44  ;;  %v1152_v40 = vmul.f32 %v1700_v63, %v2231_v27  ;;  %v1153_v6 = vmul.f32 %v1700_v63, %v2233_v21  ;;  %v1702_v56 = vpop.eup %1701  ;;  %1713 = vpow2.f32 %v956_v0  ;;  %v2869_v19 = vld [vmem:[#allocation9_spill] sm:$0xff]  ;;  %v2621_v16 = vadd.f32 %v325_v4, %v2495_v35  ;;  %v2874_v4 = vld [vmem:[#allocation14_spill] sm:$0xff] }
 0x3eb   : > { %235 = vperm.xlu0 %1562, %v215_v36   ;;  %v1150_v1 = vmul.f32 %v1702_v56, %v2287_v9  ;;  %v1151_v41 = vmul.f32 %v1702_v56, %v2289_v10  ;;  %v1704_v46 = vpop.eup %1703  ;;  %v948_v60 = vmul.f32 1.442695, %v852_v50  ;;  %v2868_v36 = vld [vmem:[#allocation30_spill] sm:$0xff]  ;;  %v293_v3 = vpop.f32.mrf.mxu0 }
 0x3ec   : > { %v1148_v27 = vmul.f32 %v1704_v46, %v2297_v2  ;;  %v1149_v21 = vmul.f32 %v1704_v46, %v2299_v13  ;;  %v1706_v54 = vpop.eup %1705  ;;  %v958_v13 = vmul.f32 1.442695, %v857_v26  ;;  %v854_v44 = vsub.f32 %v2869_v19, %v2868_v36  ;;  %v217_v56 = vld [vmem:[%s2768_s2 + $0x28] sm:$0xff]  ;;  %v2876_v19 = vld [vmem:[#allocation8_spill] sm:$0xff] }
 0x3ed   : > { %v1146_v10 = vmul.f32 %v1706_v54, %v2307_v5  ;;  %v1147_v17 = vmul.f32 %v1706_v54, %v2309_v61  ;;  %v1708_v2 = vpop.eup %1707  ;;  %v853_v5 = vsub.f32 %v2097_v39, %v2389_v32  ;;  %v2864_v61 = vld [vmem:[#allocation6_spill] sm:$0xff]  ;;  %v2867_v32 = vld [vmem:[#allocation23_spill] sm:$0xff] }
 0x3ee   : > { %1210 = vmatpush.xpose.msrb.mxu0 %v1158_v18  ;;  %1239 = vmatpush.xpose.msrb.mxu1 %v1159_v43  ;;  %v1144_v48 = vmul.f32 %v1708_v2, %v2317_v29  ;;  %v1145_v51 = vmul.f32 %v1708_v2, %v2319_v7  ;;  %v1710_v24 = vpop.eup %1709  ;;  %1715 = vpow2.f32 %v958_v13  ;;  %v855_v18 = vsub.f32 %v2870_v31, %v2868_v36  ;;  %v328_v26 = vpop.f32.mrf.mxu1 }
 0x3ef   : > { %v1142_v57 = vmul.f32 %v1710_v24, %v2864_v61  ;;  %v1143_v11 = vmul.f32 %v1710_v24, %v2865_v33  ;;  %v1712_v8 = vpop.eup %1711  ;;  %v950_v29 = vmul.f32 1.442695, %v853_v5  ;;  %1717 = vpow2.f32 %v948_v60 }
 0x3f0   : > { %v2592_v9 = vpop.xlane.xlu2 %1076  ;;  %v2607_v7 = vpop.eup %1713  ;;  %v1140_v39 = vmul.f32 %v1712_v8, %v2866_v47  ;;  %v1141_v34 = vmul.f32 %v1712_v8, %v2867_v32  ;;  %v954_v37 = vmul.f32 1.442695, %v855_v18  ;;  %v2872_v47 = vld [vmem:[#allocation27_spill] sm:$0xff]  ;;  %v2873_v32 = vld [vmem:[#allocation13_spill] sm:$0xff] }
 0x3f1   : > { %1719 = vpow2.f32 %v950_v29  ;;  %v2877_v18 = vld [vmem:[#allocation19_spill] sm:$0xff] }
 0x3f2   : > { %1211 = vmatpush.xpose.msrb.mxu0 %v1156_v20  ;;  %1240 = vmatpush.xpose.msrb.mxu1 %v1157_v55  ;;  %v952_v20 = vmul.f32 1.442695, %v854_v44 }
 0x3f4   : > { %v2609_v38 = vpop.eup %1715  ;;  %1721 = vpow2.f32 %v952_v20 }
 0x3f5   : > { %v1066_v53 = vadd.f32 %v2609_v38, %v2607_v7  ;;  %v2627_v43 = vpop.eup %1717  ;;  %1723 = vpow2.f32 %v954_v37  ;;  %v2878_v37 = vld [vmem:[#allocation20_spill] sm:$0xff] }
 0x3f6   : > { %1212 = vmatpush.xpose.msrb.mxu0 %v1154_v22  ;;  %1241 = vmatpush.xpose.msrb.mxu1 %v1155_v12  ;;  %v331_v50 = vpop.f32.mrf.mxu1 }
 0x3f7   : > { %v2629_v14 = vpop.eup %1719 }
 0x3f8   : > { %v2605_v49 = vpop.xlane.xlu2 %1079  ;;  %v1060_v35 = vadd.f32 %v2629_v14, %v2627_v43 }
 0x3fa   : > { %1213 = vmatpush.xpose.msrb.mxu0 %v1152_v40  ;;  %1242 = vmatpush.xpose.msrb.mxu1 %v1153_v6  ;;  %v2635_v22 = vpop.eup %1721 }
 0x3fb   : > { %v2637_v63 = vpop.eup %1723 }
 0x3fc   : > { %v1063_v40 = vadd.f32 %v2637_v63, %v2635_v22 }
 0x3fe   : > { %1214 = vmatpush.xpose.msrb.mxu0 %v1150_v1  ;;  %1243 = vmatpush.xpose.msrb.mxu1 %v1151_v41  ;;  %v1564_v1 = vld [vmem:[#allocation2] ss:$0 sm:$0xff] }
 0x3ff   : > { %240 = vperm.xlu2 %1563, %v216_v25  }
 0x400   : > { %v2631_v55 = vpop.xlane.xlu2 %1085 }
 0x402   : > { %1215 = vmatpush.xpose.msrb.mxu0 %v1148_v27  ;;  %1244 = vmatpush.xpose.msrb.mxu1 %v1149_v21  ;;  %v1083_v27 = vpop.xlane.xlu0 %1082 }
 0x406   : > { %1216 = vmatpush.xpose.msrb.mxu0 %v1146_v10  ;;  %1245 = vmatpush.xpose.msrb.mxu1 %v1147_v17 }
 0x408   : > { %v1089_v12 = vpop.xlane.xlu2 %1088 }
 0x40a   : > { %1217 = vmatpush.xpose.msrb.mxu0 %v1144_v48  ;;  %1246 = vmatpush.xpose.msrb.mxu1 %v1145_v51  ;;  %v296_v48 = vpop.f32.mrf.mxu0 }
 0x40e   : > { %1218 = vmatpush.xpose.msrb.mxu0 %v1142_v57  ;;  %1247 = vmatpush.xpose.msrb.mxu1 %v1143_v11 }
 0x410   : > { %v1092_v6 = vpop.xlane.xlu2 %1091 }
 0x412   : > { %1219 = vmatpush.xpose.msrb.mxu0 %v1140_v39  ;;  %1248 = vmatpush.xpose.msrb.mxu1 %v1141_v34 }
 0x415   : > { %1067 = vadd.xlane.f32.xlu0 %v1066_v53  ;;  %1220 = vmatmul.f32.vlgmr.msrb.gmra.mxu0 %v2614_v15 }
 0x416   : > { %1249 = vmatmul.f32.vlgmr.msrb.gmra.mxu1 %v2621_v16 }
 0x418   : > { %v1095_v25 = vpop.xlane.xlu2 %1094 }
 0x41d   : > { %1061 = vadd.xlane.f32.xlu0 %v1060_v35 }
 0x420   : > { %v1098_v41 = vpop.xlane.xlu2 %1097 }
 0x428   : > { %1064 = vadd.xlane.f32.xlu2 %v1063_v40  ;;  %v2879_v40 = vld [vmem:[#allocation17_spill] sm:$0xff] }
 0x431   : > { %245 = vperm.xlu0 %1562, %v217_v56  }
 0x440   : > { %1324 = vperm.xlu2 %1563, %v1564_v1   ;;  %v2881_v1 = vld [vmem:[#allocation28_spill] sm:$0xff] }
 0x442   : > { %v1101_v46 = vpop.xlane.xlu2 %1100 }
 0x44a   : > { %v2644_v21 = vpop.xlane.xlu2 %1070  ;;  %v1104_v54 = vpop.xlane.xlu0 %1103 }
 0x45a   : > { %v1107_v10 = vpop.xlane.xlu2 %1106 }
 0x45b   : > { %1725 = vrcp.f32 %v1107_v10 }
 0x45c   : > { %1727 = vrcp.f32 %v1104_v54 }
 0x45d   : > { %v236_v17 = vpop.permute.xlu0 %235  ;;  %1729 = vrcp.f32 %v1101_v46  ;;  %v2882_v46 = vld [vmem:[#allocation29_spill] sm:$0xff] }
 0x45e   : > { %v2646_v2 = vadd.f32 %v293_v3, %v236_v17  ;;  %v2648_v0 = vadd.f32 %v328_v26, %v236_v17  ;;  %1731 = vrcp.f32 %v1098_v41  ;;  %v2883_v3 = vld [vmem:[#allocation15_spill] sm:$0xff]  ;;  %v2884_v26 = vld [vmem:[#allocation16_spill] sm:$0xff] }
 0x45f   : > { %1733 = vrcp.f32 %v1095_v25 }
 0x460   : > { %1223 = vmatmul.f32.gmra.mxu0 %v2646_v2  ;;  %1252 = vmatmul.f32.gmra.mxu1 %v2648_v0  ;;  %1735 = vrcp.f32 %v1092_v6 }
 0x461   : > { %v1726_v13 = vpop.eup %1725  ;;  %1737 = vrcp.f32 %v1089_v12 }
 0x462   : > { %v1202_v51 = vmul.f32 %v1726_v13, %v2544_v52  ;;  %v1203_v24 = vmul.f32 %v1726_v13, %v2547_v42  ;;  %v241_v5 = vpop.permute.xlu2 %240  ;;  %v1728_v61 = vpop.eup %1727  ;;  %1739 = vrcp.f32 %v2631_v55  ;;  %v2880_v55 = vld [vmem:[#allocation18_spill] sm:$0xff] }
 0x463   : > { %v2654_v57 = vadd.f32 %v296_v48, %v241_v5  ;;  %v2656_v33 = vadd.f32 %v331_v50, %v241_v5  ;;  %v1200_v11 = vmul.f32 %v1728_v61, %v2525_v62  ;;  %v1201_v8 = vmul.f32 %v1728_v61, %v2528_v45  ;;  %v1730_v60 = vpop.eup %1729  ;;  %v2887_v5 = vld [vmem:[#allocation24_spill] sm:$0xff]  ;;  %v2888_v61 = vld [vmem:[#allocation11_spill] sm:$0xff] }
 0x464   : > { %1262 = vmatpush.xpose.msra.mxu0 %v1202_v51  ;;  %1291 = vmatpush.xpose.msra.mxu1 %v1203_v24  ;;  %v1198_v52 = vmul.f32 %v1730_v60, %v2515_v58  ;;  %v1199_v42 = vmul.f32 %v1730_v60, %v2517_v23  ;;  %v1732_v29 = vpop.eup %1731  ;;  %v2875_v58 = vld [vmem:[#allocation7_spill] sm:$0xff]  ;;  %1741 = vrcp.f32 %v1083_v27  ;;  %v2886_v51 = vld [vmem:[#allocation25_spill] sm:$0xff] }
 0x465   : > { %v1196_v62 = vmul.f32 %v1732_v29, %v2871_v59  ;;  %v1197_v45 = vmul.f32 %v1732_v29, %v2872_v47  ;;  %v1734_v39 = vpop.eup %1733  ;;  %1743 = vrcp.f32 %v2605_v49  ;;  %v299_v29 = vpop.f32.mrf.mxu0 }
 0x466   : > { %v1194_v34 = vmul.f32 %v1734_v39, %v2873_v32  ;;  %v1195_v53 = vmul.f32 %v1734_v39, %v2874_v4  ;;  %v1736_v36 = vpop.eup %1735  ;;  %1745 = vrcp.f32 %v2592_v9  ;;  %v2885_v9 = vld [vmem:[#allocation12_spill] sm:$0xff]  ;;  %v334_v59 = vpop.f32.mrf.mxu1 }
 0x467   : > { %v1192_v23 = vmul.f32 %v1736_v36, %v2875_v58  ;;  %v1193_v44 = vmul.f32 %v1736_v36, %v2876_v19  ;;  %v1738_v31 = vpop.eup %1737  ;;  %1747 = vrcp.f32 %v2576_v28 }
 0x468   : > { %1226 = vmatmul.f32.gmra.mxu0 %v2654_v57  ;;  %1255 = vmatmul.f32.gmra.mxu1 %v2656_v33  ;;  %v1190_v20 = vmul.f32 %v1738_v31, %v2877_v18  ;;  %v1191_v35 = vmul.f32 %v1738_v31, %v2878_v37  ;;  %v1740_v12 = vpop.eup %1739  ;;  %1749 = vrcp.f32 %v2644_v21  ;;  %v1757_v31 = vld [vmem:[%s1916_s8] sm:$0xff] }
 0x469   : > { %1263 = vmatpush.xpose.msra.mxu0 %v1200_v11  ;;  %1292 = vmatpush.xpose.msra.mxu1 %v1201_v8  ;;  %v1188_v6 = vmul.f32 %v1740_v12, %v2879_v40  ;;  %v1189_v56 = vmul.f32 %v1740_v12, %v2880_v55 }
 0x46a   : > { %v1742_v25 = vpop.eup %1741 }
 0x46b   : > { %v1186_v41 = vmul.f32 %v1742_v25, %v2881_v1  ;;  %v1187_v27 = vmul.f32 %v1742_v25, %v2882_v46  ;;  %v1744_v54 = vpop.eup %1743  ;;  %v1760_v25 = vld [vmem:[%s1916_s8 + $0x30] sm:$0xff] }
 0x46c   : > { %v1184_v49 = vmul.f32 %v1744_v54, %v2883_v3  ;;  %v1185_v10 = vmul.f32 %v1744_v54, %v2884_v26  ;;  %v1746_v17 = vpop.eup %1745  ;;  %v1761_v3 = vld [vmem:[%s1916_s8 + $0x8] sm:$0xff] }
 0x46d   : > { %1264 = vmatpush.xpose.msra.mxu0 %v1198_v52  ;;  %1293 = vmatpush.xpose.msra.mxu1 %v1199_v42  ;;  %v1182_v48 = vmul.f32 %v1746_v17, %v2885_v9  ;;  %v1183_v24 = vmul.f32 %v1746_v17, %v2886_v51  ;;  %v1748_v50 = vpop.eup %1747  ;;  %v2889_v52 = vld [vmem:[#allocation31_spill] sm:$0xff]  ;;  %v1762_v9 = vld [vmem:[%s1916_s8 + $0x18] sm:$0xff] }
 0x46e   : > { %v1180_v28 = vmul.f32 %v1748_v50, %v2887_v5  ;;  %v1181_v11 = vmul.f32 %v1748_v50, %v2888_v61  ;;  %v1750_v8 = vpop.eup %1749 }
 0x46f   : > { %v1178_v60 = vmul.f32 %v1750_v8, %v2521_v30  ;;  %v1179_v21 = vmul.f32 %v1750_v8, %v2889_v52 }
 0x471   : > { %1265 = vmatpush.xpose.msra.mxu0 %v1196_v62  ;;  %1294 = vmatpush.xpose.msra.mxu1 %v1197_v45 }
 0x475   : > { %1266 = vmatpush.xpose.msra.mxu0 %v1194_v34  ;;  %1295 = vmatpush.xpose.msra.mxu1 %v1195_v53 }
 0x479   : > { %1267 = vmatpush.xpose.msra.mxu0 %v1192_v23  ;;  %1296 = vmatpush.xpose.msra.mxu1 %v1193_v44 }
 0x47d   : > { %1268 = vmatpush.xpose.msra.mxu0 %v1190_v20  ;;  %1297 = vmatpush.xpose.msra.mxu1 %v1191_v35 }
 0x481   : > { %1269 = vmatpush.xpose.msra.mxu0 %v1188_v6  ;;  %1298 = vmatpush.xpose.msra.mxu1 %v1189_v56 }
 0x485   : > { %1270 = vmatpush.xpose.msra.mxu0 %v1186_v41  ;;  %1299 = vmatpush.xpose.msra.mxu1 %v1187_v27 }
 0x488   : > { %v1068_v13 = vpop.xlane.xlu0 %1067 }
 0x489   : > { %1271 = vmatpush.xpose.msra.mxu0 %v1184_v49  ;;  %1300 = vmatpush.xpose.msra.mxu1 %v1185_v10  ;;  %1751 = vrcp.f32 %v1068_v13 }
 0x48d   : > { %1272 = vmatpush.xpose.msra.mxu0 %v1182_v48  ;;  %1301 = vmatpush.xpose.msra.mxu1 %v1183_v24 }
 0x48f   : > { %v1752_v42 = vpop.eup %1751 }
 0x490   : > { %v1176_v62 = vmul.f32 %v1752_v42, %v2607_v7  ;;  %v1177_v47 = vmul.f32 %v1752_v42, %v2609_v38  ;;  %v1062_v45 = vpop.xlane.xlu0 %1061 }
 0x491   : > { %1273 = vmatpush.xpose.msra.mxu0 %v1180_v28  ;;  %1302 = vmatpush.xpose.msra.mxu1 %v1181_v11  ;;  %v1763_v28 = vld [vmem:[%s1916_s8 + $0x28] sm:$0xff] }
 0x492   : > { %v1221_v30 = vpop.f32.mrf.mxu0 }
 0x493   : > { %v1250_v32 = vpop.f32.mrf.mxu1 }
 0x494   : > { %v1251_v4 = vadd.f32 %v1250_v32, %v1221_v30 }
 0x495   : > { %1274 = vmatpush.xpose.msra.mxu0 %v1178_v60  ;;  %1303 = vmatpush.xpose.msra.mxu1 %v1179_v21  ;;  %v1764_v21 = vld [vmem:[%s1916_s8 + $0x38] sm:$0xff] }
 0x499   : > { %1275 = vmatpush.xpose.msra.mxu0 %v1176_v62  ;;  %1304 = vmatpush.xpose.msra.mxu1 %v1177_v47 }
 0x49b   : > { %v1065_v39 = vpop.xlane.xlu2 %1064 }
 0x49c   : > { %1753 = vrcp.f32 %v1065_v39 }
 0x49d   : > { %1755 = vrcp.f32 %v1062_v45 }
 0x4a2   : > { %v1754_v34 = vpop.eup %1753 }
 0x4a3   : > { %v2694_v53 = vpop.permute.xlu2 %1324  ;;  %v246_v36 = vpop.permute.xlu0 %245  ;;  %v1174_v7 = vmul.f32 %v1754_v34, %v2635_v22  ;;  %v1175_v38 = vmul.f32 %v1754_v34, %v2637_v63  ;;  %v1758_v63 = vld [vmem:[%s1916_s8 + $0x10] sm:$0xff] }
 0x4a4   : > { %v1756_v58 = vpop.eup %1755  ;;  %v1327_v23 = vmul.f32 %v2694_v53, %v1251_v4  ;;  %v300_v19 = vadd.f32 %v299_v29, %v246_v36  ;;  %v335_v44 = vadd.f32 %v334_v59, %v246_v36 }
 0x4a5   : > { %1276 = vmatpush.xpose.msra.mxu0 %v1174_v7  ;;  %1305 = vmatpush.xpose.msra.mxu1 %v1175_v38  ;;  %v1172_v20 = vmul.f32 %v1756_v58, %v2627_v43  ;;  %v1173_v37 = vmul.f32 %v1756_v58, %v2629_v14 }
 0x4a6   : > { %v1335_v18 = vadd.f32 %v1757_v31, %v1327_v23  ;;  %1229 = vmatmul.f32.gmra.mxu0 %v300_v19  ;;  %1258 = vmatmul.f32.gmra.mxu1 %v335_v44 }
 0x4a8   : > { %1343 = vst [vmem:[%s2702_s16] sm:$0xff] %v1335_v18 }
 0x4a9   : > { %1277 = vmatpush.xpose.msra.mxu0 %v1172_v20  ;;  %1306 = vmatpush.xpose.msra.mxu1 %v1173_v37 }
 0x4ae   : > { %1278 = vmatmul.f32.vlgmr.msra.gmra.mxu0 %v2614_v15  ;;  %1307 = vmatmul.f32.vlgmr.msra.gmra.mxu1 %v2621_v16 }
 0x4b6   : > { %1281 = vmatmul.f32.gmra.mxu0 %v2646_v2  ;;  %1310 = vmatmul.f32.gmra.mxu1 %v2648_v0 }
 0x4be   : > { %1284 = vmatmul.f32.gmra.mxu0 %v2654_v57  ;;  %1313 = vmatmul.f32.gmra.mxu1 %v2656_v33  ;;  %v1759_v33 = vld [vmem:[%s1916_s8 + $0x20] sm:$0xff] }
 0x4c6   : > { %1287 = vmatmul.f32.gmra.mxu0 %v300_v19  ;;  %1316 = vmatmul.f32.gmra.mxu1 %v335_v44 }
 0x4dd   : > { %v1224_v43 = vpop.f32.mrf.mxu0  ;;  %v1253_v14 = vpop.f32.mrf.mxu1 }
 0x4de   : > { %v1254_v22 = vadd.f32 %v1253_v14, %v1224_v43 }
 0x4e0   : > { %v1329_v15 = vmul.f32 %v2694_v53, %v1254_v22 }
 0x4e2   : > { %v1337_v16 = vadd.f32 %v1758_v63, %v1329_v15 }
 0x4e4   : > { %1345 = vst [vmem:[%s2702_s16 + $0x10] sm:$0xff] %v1337_v16 }
 0x4e5   : > { %v1227_v2 = vpop.f32.mrf.mxu0  ;;  %v1256_v0 = vpop.f32.mrf.mxu1 }
 0x4e6   : > { %v1257_v35 = vadd.f32 %v1256_v0, %v1227_v2 }
 0x4e8   : > { %v1331_v57 = vmul.f32 %v2694_v53, %v1257_v35 }
 0x4ea   : > { %v1339_v12 = vadd.f32 %v1759_v33, %v1331_v57 }
 0x4ec   : > { %1347 = vst [vmem:[%s2702_s16 + $0x20] sm:$0xff] %v1339_v12 }
 0x523   : > { %v1230_v40 = vpop.f32.mrf.mxu0  ;;  %v1259_v6 = vpop.f32.mrf.mxu1 }
 0x524   : > { %v1260_v55 = vadd.f32 %v1259_v6, %v1230_v40 }
 0x526   : > { %v1333_v56 = vmul.f32 %v2694_v53, %v1260_v55 }
 0x528   : > { %v1341_v1 = vadd.f32 %v1760_v25, %v1333_v56 }
 0x52a   : > { %1349 = vst [vmem:[%s2702_s16 + $0x30] sm:$0xff] %v1341_v1 }
 0x52b   : > { %v1279_v41 = vpop.f32.mrf.mxu0  ;;  %v1308_v46 = vpop.f32.mrf.mxu1 }
 0x52c   : > { %v1309_v27 = vadd.f32 %v1308_v46, %v1279_v41 }
 0x52e   : > { %v1328_v54 = vmul.f32 %v2694_v53, %v1309_v27 }
 0x530   : > { %v1336_v49 = vadd.f32 %v1761_v3, %v1328_v54 }
 0x532   : > { %1344 = vst [vmem:[%s2702_s16 + $0x8] sm:$0xff] %v1336_v49 }
 0x533   : > { %v1282_v26 = vpop.f32.mrf.mxu0  ;;  %v1311_v10 = vpop.f32.mrf.mxu1 }
 0x534   : > { %v1312_v17 = vadd.f32 %v1311_v10, %v1282_v26 }
 0x536   : > { %v1330_v13 = vmul.f32 %v2694_v53, %v1312_v17 }
 0x538   : > { %v1338_v48 = vadd.f32 %v1762_v9, %v1330_v13 }
 0x53a   : > { %1346 = vst [vmem:[%s2702_s16 + $0x18] sm:$0xff] %v1338_v48 }
 0x53b   : > { %v1285_v51 = vpop.f32.mrf.mxu0  ;;  %v1314_v24 = vpop.f32.mrf.mxu1 }
 0x53c   : > { %v1315_v50 = vadd.f32 %v1314_v24, %v1285_v51 }
 0x53e   : > { %v1332_v5 = vmul.f32 %v2694_v53, %v1315_v50 }
 0x540   : > { %v1340_v61 = vadd.f32 %v1763_v28, %v1332_v5 }
 0x542   : > { %1348 = vst [vmem:[%s2702_s16 + $0x28] sm:$0xff] %v1340_v61 }
 0x543   : > { %v1288_v11 = vpop.f32.mrf.mxu0  ;;  %v1317_v8 = vpop.f32.mrf.mxu1 }
 0x544   : > { %v1318_v60 = vadd.f32 %v1317_v8, %v1288_v11 }
 0x546   : > { %v1334_v52 = vmul.f32 %v2694_v53, %v1318_v60 }
 0x548   : > { %v1342_v42 = vadd.f32 %v1764_v21, %v1334_v52 }
 0x54a   : > { %1350 = vst [vmem:[%s2702_s16 + $0x38] sm:$0xff] %v1342_v42 }
 0x54b   : > { %1792 = shalt.err (!%p1789_p3)
}
 0x54c   : > { %s1830_s8 = smov 256   ;;  %s1831_s13 = smov 16  }
 0x54d   : > { %1519 = dma.vmem_to_hbm [thread:$0]  (%p1898_p5), %s1365_s29, 1024, %s1367_s30, %s1352_s3, %s1830_s8, %s1830_s8, %s1831_s13  }
 0x54e PF: > { %p1525_p4 = scmp.ge.s32.totalorder %s1827_s20, 2  ;;  %s1381_s14 = sand.u32 1, %s1815_s17  }
 0x54f   : > { %s1382_s15 = scalar_lea.sflag [#allocation4], %s1381_s14 }
 0x550   : > { %p1522_p7 = pnand %p1525_p4, %p1902_p6 }
 0x552   : > { %p1523_p8 = pneg %p1522_p7 }
 0x554   : > { %1810 = dma.done.wait (%p1523_p8), %s1382_s15, 1024  }
 0x555   : > { %1812 = vsyncadd (%p1523_p8), %s1382_s15, 4294966272  ;;  %p16_p9 = scmp.ge.s32.totalorder %s1885_s22, 4   ;;  %s2890_s17 = smov %s1819_s18 }
 0x556   : > { %s2891_s18 = smov %s1823_s19  ;;  %s2892_s19 = smov %s1896_s25 }
 0x557   : > { %s2893_s20 = smov %s1885_s22  ;;  %18 = sbr.rel (!%p16_p9) target bundleno = 6 (0x6), region = 71 }
 0x55c   :  { %1388 = vsyncpa [#allocation4], 1 }
 0x55d   :  { %1390 = vsyncpa [#allocation4 + $0x1], 1 }

</bundles_post_ra>
